<compile_context>
chip_gen: v7x
topology: tpu7x:2x2x1
jax: 0.10.0
libtpu: 0.0.40
codegen_flags: <defaults>
</compile_context>

<pallas_src>
import numpy as np
import jax
import jax.numpy as jnp
from jax.experimental import pallas as pl
from jax.experimental.pallas import tpu as pltpu

# ---- problem sizes (small, consistent with the module) -----------------------
B = 2              # batch
S = 8              # seq length
H = 32             # hidden_size (embed_dim of the attention)
NUM_HEADS = 8      # nn.MultiheadAttention(num_heads=8)
HEAD_DIM = H // NUM_HEADS
DM = 64            # config.hidden_dim (default 256, shrunk for the demo)
DM2 = DM // 2
MIN_W = 0.1        # config.min_weight
MAX_W = 5.0        # config.max_weight
LN_EPS = 1e-5      # PyTorch LayerNorm default
MAX_POS = 2048     # max_position_embeddings
NEG_INF = -1e30

T = B * S                      # tokens folded onto sublanes (16)
L = NUM_HEADS * B * S          # merged key axis: heads x batch x pos = 128 lanes

# rows of the packed bias / LayerNorm-parameter slab (one (9,128) f32 array)
ROW_BQKV, ROW_BO, ROW_B1, ROW_G1, ROW_BE1, ROW_B2, ROW_G2, ROW_BE2, ROW_B3 = range(9)
NVEC, VEC_LANES = 9, 128


def _build_blocks():
    """Compile-time block-structure constants for the merged attention.

    Merged key-lane index: col = h*(B*S) + b*S + j.
      k_block[r, col] = 1  iff r // HEAD_DIM == col // (B*S)      (H, L)
      v_block[row, c] = 1  iff c // HEAD_DIM == row // (B*S)      (L, H)
      g_sum[row, col] = 1  iff row // (B*S) == col // (B*S)       (L, L)
    Packed into one (H + 2L, 128) f32 slab (single ref / single DMA).
    """
    col_head = np.arange(L) // (B * S)
    r = np.arange(H)
    k_block = (r[:, None] // HEAD_DIM == col_head[None, :]).astype(np.float32)
    v_block = k_block.T.copy()
    g_sum = (col_head[:, None] == col_head[None, :]).astype(np.float32)
    slab = np.zeros((H + 2 * L, 128), np.float32)
    slab[0:H, :L] = k_block
    slab[H:H + L, :H] = v_block
    slab[H + L:H + 2 * L, :L] = g_sum
    return jnp.asarray(slab)


def _layer_norm(x, gamma, beta):
    mu = jnp.mean(x, axis=-1, keepdims=True)
    var = jnp.mean((x - mu) ** 2, axis=-1, keepdims=True)
    return (x - mu) * jax.lax.rsqrt(var + LN_EPS) * gamma + beta


def _dot(a, b):
    """f32 MXU matmul (latency-bound at these sizes; bf16 buys nothing)."""
    return jnp.dot(a, b, preferred_element_type=jnp.float32)


def meta_weight_kernel(x_ref, pos_ref, negmask_ref, maskcol_ref,
                       wattn_ref, wmlp_ref, vec_ref, blocks_ref, out_ref):
    Tn, Hd = x_ref.shape                  # (B*S, hidden)
    Sn = pos_ref.shape[0]
    Bn = Tn // Sn
    Ln = negmask_ref.shape[1]             # merged key axis = NH*B*S = 128
    HD = Hd // NUM_HEADS

    # -- packed bias / LN-parameter rows ------------------------------------
    vecs = vec_ref[...]                                        # (9, 128) f32
    b_qkv = vecs[ROW_BQKV:ROW_BQKV + 1, :3 * Hd]
    b_o   = vecs[ROW_BO:ROW_BO + 1, :Hd]
    b_1   = vecs[ROW_B1:ROW_B1 + 1, :DM]
    g_1   = vecs[ROW_G1:ROW_G1 + 1, :DM]
    be_1  = vecs[ROW_BE1:ROW_BE1 + 1, :DM]
    b_2   = vecs[ROW_B2:ROW_B2 + 1, :DM2]
    g_2   = vecs[ROW_G2:ROW_G2 + 1, :DM2]
    be_2  = vecs[ROW_BE2:ROW_BE2 + 1, :DM2]
    b_3   = vecs[ROW_B3:ROW_B3 + 1, :1]

    # -- precomputed block-structure constants (hoisted out of the kernel) ---
    blocks = blocks_ref[...]                                   # (288, 128)
    k_block = blocks[0:Hd, :Ln]                                # (H,  L)
    v_block = blocks[Hd:Hd + Ln, :Hd]                          # (L,  H)
    g_sum   = blocks[Hd + Ln:Hd + 2 * Ln, :Ln]                 # (L,  L)

    # x = hidden + positional embedding (pos broadcast over the batch).
    x = x_ref[...] + jnp.tile(pos_ref[...], (Bn, 1))           # (T, H) f32

    # -- fused q/k/v projection: one MXU push for all tokens & heads ---------
    wa = wattn_ref[...]                                        # (H, 128): [Wqkv | Wo]
    qkv = _dot(x, wa[:, :3 * Hd]) + b_qkv                      # (T, 3H)
    q, k, v = qkv[:, :Hd], qkv[:, Hd:2 * Hd], qkv[:, 2 * Hd:3 * Hd]

    # -- merged block-diagonal attention: all batches & heads in 128 lanes ---
    scale = 1.0 / (HD ** 0.5)
    kbig = jnp.tile(k.T, (1, NUM_HEADS)) * k_block             # (H, L)
    s = _dot(q, kbig) * scale + negmask_ref[...]               # (T, L), masked = -1e30
    # one row-wise max shift is an exact softmax shift; each (batch, head)
    # group is normalized by its own group-sum below.
    p = jnp.exp(s - jnp.max(s, axis=-1, keepdims=True))        # masked -> exp(-huge)=0
    denom = _dot(p, g_sum)                                     # per-head sums, bcast in-group
    p = p * pl.reciprocal(jnp.maximum(denom, 1e-30), approx=True)
    vbig = jnp.tile(v, (NUM_HEADS, 1)) * v_block               # (L, H)
    ctx = _dot(p, vbig)                                        # (T, H): heads on lanes
    attn = _dot(ctx, wa[:, 3 * Hd:4 * Hd]) + b_o               # output projection

    # -- meta MLP; w1 split avoids materializing concat([x, attn], -1) -------
    wm = wmlp_ref[...]                                         # (2H, 128): [W1 | W2 | w3]
    w1x = wm[0:Hd, 0:DM]
    w1a = wm[Hd:2 * Hd, 0:DM]
    w2  = wm[:, DM:DM + DM2]
    w3  = wm[0:DM2, DM + DM2:DM + DM2 + 1]

    h1 = jnp.maximum(_layer_norm(_dot(x, w1x) + _dot(attn, w1a) + b_1, g_1, be_1), 0.0)
    # Dropout(0.1) layers are identities in eval mode.
    h2 = jnp.maximum(_layer_norm(_dot(h1, w2) + b_2, g_2, be_2), 0.0)
    base = _dot(h2, w3) + b_3                                  # (T, 1)

    # TODO(synk): ImportanceMemory lookups / manual token weights are host-side
    # Python dicts with no device equivalent; for a fresh memory importance==0
    # and there are no manual weights, so final == clamp(base) exactly.
    final = jnp.where(maskcol_ref[...] > 0.5,
                      jnp.clip(base, MIN_W, MAX_W), 0.0)
    out_ref[...] = final


BLOCKS = _build_blocks()


def init_params(key):
    ks = jax.random.split(key, 9)
    sc = 0.1
    wq = sc * jax.random.normal(ks[1], (H, H), jnp.float32)
    wk = sc * jax.random.normal(ks[2], (H, H), jnp.float32)
    wv = sc * jax.random.normal(ks[3], (H, H), jnp.float32)
    wo = sc * jax.random.normal(ks[4], (H, H), jnp.float32)
    w1 = sc * jax.random.normal(ks[5], (2 * H, DM), jnp.float32)
    w2 = sc * jax.random.normal(ks[6], (DM, DM2), jnp.float32)
    w3 = sc * jax.random.normal(ks[7], (DM2, 1), jnp.float32)
    bq = sc * jax.random.normal(ks[8], (H,), jnp.float32)

    # Attention-weight slab (weights stored transposed, y = x @ W):
    #   cols 0:96  = [Wq | Wk | Wv],   cols 96:128 = Wo
    w_attn = jnp.zeros((H, 128), jnp.float32)
    w_attn = (w_attn.at[:, 0:H].set(wq).at[:, H:2 * H].set(wk)
              .at[:, 2 * H:3 * H].set(wv).at[:, 3 * H:4 * H].set(wo))

    # MLP-weight slab:
    #   cols 0:64 = W1 (rows 0:H act on x, rows H:2H on attended),
    #   cols 64:96 = W2, col 96 (rows 0:DM2) = w3
    w_mlp = jnp.zeros((2 * H, 128), jnp.float32)
    w_mlp = w_mlp.at[:, 0:DM].set(w1)
    w_mlp = w_mlp.at[:, DM:DM + DM2].set(w2)
    w_mlp = w_mlp.at[0:DM2, DM + DM2].set(w3[:, 0])

    # Packed small-vector slab: one row per bias / LN parameter vector.
    # (When porting a real checkpoint, split in_proj_bias into bq|bk|bv here.)
    vecs = jnp.zeros((NVEC, VEC_LANES), jnp.float32)
    vecs = vecs.at[ROW_BQKV, :H].set(bq)        # bk, bv stay zero
    vecs = vecs.at[ROW_G1, :DM].set(1.0)        # LayerNorm gammas
    vecs = vecs.at[ROW_G2, :DM2].set(1.0)
    vecs = vecs.at[ROW_B3, 0].set(0.5)          # final-layer bias
    # bo, b1, be1, b2, be2 rows are already zero.

    return {
        "pos_emb": jax.random.normal(ks[0], (1, MAX_POS, H), jnp.float32),
        "w_attn": w_attn,
        "w_mlp": w_mlp,
        "vecs": vecs,
    }


def enhanced_meta_weight_forward(hidden_states, token_ids, attention_mask, params):
    """hidden_states: (B, S, H) f32; token_ids: (B, S) i32 (feeds only the
    host-side importance memory, unused on-device); attention_mask: (B, S)
    bool. Returns final token weights (B, S) f32."""
    del token_ids
    Bn, Sn, Hn = hidden_states.shape
    Tn = Bn * Sn
    Ln = NUM_HEADS * Tn
    x2d = hidden_states.reshape(Tn, Hn)                   # fold batch onto sublanes
    pos2d = params["pos_emb"][0, :Sn, :]                  # (S, H)
    mask_f = attention_mask.astype(jnp.float32)

    # Additive score mask on the merged key axis col = h*(B*S) + b*S + j:
    # 0 where (query batch == key batch) AND key is valid, else -1e30.
    row_b = jnp.arange(Tn) // Sn                          # query batch
    col_t = jnp.arange(Ln) % Tn                           # key token index b*S + j
    col_b = col_t // Sn                                   # key batch
    valid = (row_b[:, None] == col_b[None, :]) & (mask_f.reshape(Tn)[col_t][None, :] > 0.5)
    neg_mask = jnp.where(valid, 0.0, NEG_INF).astype(jnp.float32)   # (T, L)
    mask_col = mask_f.reshape(Tn, 1)                      # final-gating view

    inputs = [x2d, pos2d, neg_mask, mask_col,
              params["w_attn"], params["w_mlp"], params["vecs"], BLOCKS]

    def full_spec(a):
        return pl.BlockSpec(a.shape, lambda i, _n=a.ndim: (0,) * _n)

    out = pl.pallas_call(
        meta_weight_kernel,
        out_shape=jax.ShapeDtypeStruct((Tn, 1), jnp.float32),
        grid=(1,),                                        # single step: everything fits
        in_specs=[full_spec(a) for a in inputs],
        out_specs=pl.BlockSpec((Tn, 1), lambda i: (0, 0)),
        compiler_params=pltpu.CompilerParams(
            dimension_semantics=("arbitrary",)),
    )(*inputs)
    return out.reshape(Bn, Sn)


def reference_forward(hidden_states, attention_mask, params):
    """Pure-JAX reference (same math as the PyTorch module in eval mode)."""
    Bn, Sn, Hn = hidden_states.shape
    x = hidden_states + params["pos_emb"][:, :Sn, :]
    wa = params["w_attn"]
    wq, wk, wv, wo = (wa[:, :Hn], wa[:, Hn:2 * Hn], wa[:, 2 * Hn:3 * Hn], wa[:, 3 * Hn:4 * Hn])
    vecs = params["vecs"]
    bq, bk, bv = (vecs[ROW_BQKV, :Hn], vecs[ROW_BQKV, Hn:2 * Hn], vecs[ROW_BQKV, 2 * Hn:3 * Hn])
    q = x @ wq + bq
    k = x @ wk + bk
    v = x @ wv + bv
    def heads(z):
        return z.reshape(Bn, Sn, NUM_HEADS, HEAD_DIM).transpose(0, 2, 1, 3)
    qh, kh, vh = heads(q), heads(k), heads(v)
    scores = jnp.einsum('bhqd,bhkd->bhqk', qh, kh) / (HEAD_DIM ** 0.5)
    scores = jnp.where(attention_mask[:, None, None, :], scores, NEG_INF)
    p = jax.nn.softmax(scores, axis=-1)
    ctx = jnp.einsum('bhqk,bhkd->bhqd', p, vh).transpose(0, 2, 1, 3).reshape(Bn, Sn, Hn)
    attn = ctx @ wo + vecs[ROW_BO, :Hn]

    def ln(z, g, b):
        mu = z.mean(-1, keepdims=True)
        var = ((z - mu) ** 2).mean(-1, keepdims=True)
        return (z - mu) / jnp.sqrt(var + LN_EPS) * g + b

    wm = params["w_mlp"]
    w1, w2 = wm[:, :DM], wm[:, DM:DM + DM2]
    w3 = wm[0:DM2, DM + DM2:DM + DM2 + 1]
    comb = jnp.concatenate([x, attn], axis=-1)
    h1 = jax.nn.relu(ln(comb @ w1 + vecs[ROW_B1, :DM], vecs[ROW_G1, :DM], vecs[ROW_BE1, :DM]))
    h2 = jax.nn.relu(ln(h1 @ w2 + vecs[ROW_B2, :DM2], vecs[ROW_G2, :DM2], vecs[ROW_BE2, :DM2]))
    base = (h2 @ w3)[..., 0] + vecs[ROW_B3, 0]
    return jnp.where(attention_mask, jnp.clip(base, MIN_W, MAX_W), 0.0)


if __name__ == "__main__":
    key = jax.random.PRNGKey(0)
    k_param, k_x, k_tok = jax.random.split(key, 3)

    params = init_params(k_param)
    hidden_states = jax.random.normal(k_x, (B, S, H), jnp.float32)
    token_ids = jax.random.randint(k_tok, (B, S), 0, 1000, jnp.int32)
    # last two positions of batch 0 are padding
    attention_mask = jnp.ones((B, S), dtype=bool).at[0, S - 2:].set(False)

    final_weights = enhanced_meta_weight_forward(
        hidden_states, token_ids, attention_mask, params)
    final_weights = jax.block_until_ready(final_weights)

    assert final_weights.shape == (B, S)
    assert bool(jnp.all(jnp.isfinite(final_weights)))
    # masked positions must be exactly zero; valid ones within [MIN_W, MAX_W]
    assert bool(jnp.all(jnp.where(attention_mask,
                                  (final_weights >= MIN_W) & (final_weights <= MAX_W),
                                  final_weights == 0.0)))
    # parity against the pure-JAX reference (approx reciprocal => loose-ish tol)
    ref = reference_forward(hidden_states, attention_mask, params)
    assert bool(jnp.allclose(final_weights, ref, atol=1e-2, rtol=1e-2))
    print("KERNEL_OK")
</pallas_src>

<mosaic_0001>
module attributes {stable_mosaic.version = 11 : i64} {
  func.func @meta_weight_kernel(%arg0: i32, %arg1: memref<16x32xf32, #tpu.memory_space<vmem>>, %arg2: memref<8x32xf32, #tpu.memory_space<vmem>>, %arg3: memref<16x128xf32, #tpu.memory_space<vmem>>, %arg4: memref<16x1xf32, #tpu.memory_space<vmem>>, %arg5: memref<32x128xf32, #tpu.memory_space<vmem>>, %arg6: memref<64x128xf32, #tpu.memory_space<vmem>>, %arg7: memref<9x128xf32, #tpu.memory_space<vmem>>, %arg8: memref<288x128xf32, #tpu.memory_space<vmem>>, %arg9: memref<16x1xf32, #tpu.memory_space<vmem>>) attributes {dimension_semantics = [#tpu.dimension_semantics<arbitrary>], iteration_bounds = array<i64: 1>, scalar_prefetch = 0 : i64, scratch_operands = 0 : i64, tpu.core_type = #tpu.core_type<tc>, window_params = [{pipeline_mode = #tpu.pipeline_mode<synchronous>, transform_indices = @transform_0, window_bounds = array<i64: 16, 32>}, {pipeline_mode = #tpu.pipeline_mode<synchronous>, transform_indices = @transform_1, window_bounds = array<i64: 8, 32>}, {pipeline_mode = #tpu.pipeline_mode<synchronous>, transform_indices = @transform_2, window_bounds = array<i64: 16, 128>}, {pipeline_mode = #tpu.pipeline_mode<synchronous>, transform_indices = @transform_3, window_bounds = array<i64: 16, 1>}, {pipeline_mode = #tpu.pipeline_mode<synchronous>, transform_indices = @transform_4, window_bounds = array<i64: 32, 128>}, {pipeline_mode = #tpu.pipeline_mode<synchronous>, transform_indices = @transform_5, window_bounds = array<i64: 64, 128>}, {pipeline_mode = #tpu.pipeline_mode<synchronous>, transform_indices = @transform_6, window_bounds = array<i64: 9, 128>}, {pipeline_mode = #tpu.pipeline_mode<synchronous>, transform_indices = @transform_7, window_bounds = array<i64: 288, 128>}, {pipeline_mode = #tpu.pipeline_mode<synchronous>, transform_indices = @transform_8, window_bounds = array<i64: 16, 1>}]} {
    %c0 = arith.constant 0 : index
    %c0_0 = arith.constant 0 : index
    %0 = vector.load %arg7[%c0, %c0_0] : memref<9x128xf32, #tpu.memory_space<vmem>>, vector<9x128xf32>
    %1 = vector.extract_strided_slice %0 {offsets = [0, 0], sizes = [1, 96], strides = [1, 1]} : vector<9x128xf32> to vector<1x96xf32>
    %2 = vector.extract_strided_slice %0 {offsets = [1, 0], sizes = [1, 32], strides = [1, 1]} : vector<9x128xf32> to vector<1x32xf32>
    %3 = vector.extract_strided_slice %0 {offsets = [2, 0], sizes = [1, 64], strides = [1, 1]} : vector<9x128xf32> to vector<1x64xf32>
    %4 = vector.extract_strided_slice %0 {offsets = [3, 0], sizes = [1, 64], strides = [1, 1]} : vector<9x128xf32> to vector<1x64xf32>
    %5 = vector.extract_strided_slice %0 {offsets = [4, 0], sizes = [1, 64], strides = [1, 1]} : vector<9x128xf32> to vector<1x64xf32>
    %6 = vector.extract_strided_slice %0 {offsets = [5, 0], sizes = [1, 32], strides = [1, 1]} : vector<9x128xf32> to vector<1x32xf32>
    %7 = vector.extract_strided_slice %0 {offsets = [6, 0], sizes = [1, 32], strides = [1, 1]} : vector<9x128xf32> to vector<1x32xf32>
    %8 = vector.extract_strided_slice %0 {offsets = [7, 0], sizes = [1, 32], strides = [1, 1]} : vector<9x128xf32> to vector<1x32xf32>
    %9 = vector.extract_strided_slice %0 {offsets = [8, 0], sizes = [1, 1], strides = [1, 1]} : vector<9x128xf32> to vector<1x1xf32>
    %c0_1 = arith.constant 0 : index
    %c0_2 = arith.constant 0 : index
    %10 = vector.load %arg8[%c0_1, %c0_2] : memref<288x128xf32, #tpu.memory_space<vmem>>, vector<288x128xf32>
    %11 = vector.extract_strided_slice %10 {offsets = [0, 0], sizes = [32, 128], strides = [1, 1]} : vector<288x128xf32> to vector<32x128xf32>
    %12 = vector.extract_strided_slice %10 {offsets = [32, 0], sizes = [128, 32], strides = [1, 1]} : vector<288x128xf32> to vector<128x32xf32>
    %13 = vector.extract_strided_slice %10 {offsets = [160, 0], sizes = [128, 128], strides = [1, 1]} : vector<288x128xf32> to vector<128x128xf32>
    %c0_3 = arith.constant 0 : index
    %c0_4 = arith.constant 0 : index
    %14 = vector.load %arg1[%c0_3, %c0_4] : memref<16x32xf32, #tpu.memory_space<vmem>>, vector<16x32xf32>
    %c0_5 = arith.constant 0 : index
    %c0_6 = arith.constant 0 : index
    %15 = vector.load %arg2[%c0_5, %c0_6] : memref<8x32xf32, #tpu.memory_space<vmem>>, vector<8x32xf32>
    %16 = tpu.concatenate %15, %15 in 0 : vector<8x32xf32>, vector<8x32xf32> -> vector<16x32xf32>
    %17 = arith.addf %14, %16 : vector<16x32xf32>
    %c0_7 = arith.constant 0 : index
    %c0_8 = arith.constant 0 : index
    %18 = vector.load %arg5[%c0_7, %c0_8] : memref<32x128xf32, #tpu.memory_space<vmem>>, vector<32x128xf32>
    %19 = vector.extract_strided_slice %18 {offsets = [0, 0], sizes = [32, 96], strides = [1, 1]} : vector<32x128xf32> to vector<32x96xf32>
    %cst = arith.constant dense<0.000000e+00> : vector<16x96xf32>
    %20 = tpu.matmul %17, %19, %cst {dimension_numbers = #tpu.dot_dimension_numbers<[1], [0], [0], [1], [0, 0, 1, 1], [], []>} : vector<16x32xf32>, vector<32x96xf32>, vector<16x96xf32> -> vector<16x96xf32>
    %21 = vector.broadcast %1 : vector<1x96xf32> to vector<16x96xf32>
    %22 = arith.addf %20, %21 : vector<16x96xf32>
    %23 = vector.extract_strided_slice %22 {offsets = [0, 0], sizes = [16, 32], strides = [1, 1]} : vector<16x96xf32> to vector<16x32xf32>
    %24 = vector.extract_strided_slice %22 {offsets = [0, 32], sizes = [16, 32], strides = [1, 1]} : vector<16x96xf32> to vector<16x32xf32>
    %25 = vector.extract_strided_slice %22 {offsets = [0, 64], sizes = [16, 32], strides = [1, 1]} : vector<16x96xf32> to vector<16x32xf32>
    %26 = tpu.transpose %24, [1, 0] : vector<16x32xf32> -> vector<32x16xf32>
    %27 = tpu.concatenate %26, %26, %26, %26, %26, %26, %26, %26 in 1 : vector<32x16xf32>, vector<32x16xf32>, vector<32x16xf32>, vector<32x16xf32>, vector<32x16xf32>, vector<32x16xf32>, vector<32x16xf32>, vector<32x16xf32> -> vector<32x128xf32>
    %28 = arith.mulf %27, %11 : vector<32x128xf32>
    %cst_9 = arith.constant dense<0.000000e+00> : vector<16x128xf32>
    %29 = tpu.matmul %23, %28, %cst_9 {dimension_numbers = #tpu.dot_dimension_numbers<[1], [0], [0], [1], [0, 0, 1, 1], [], []>} : vector<16x32xf32>, vector<32x128xf32>, vector<16x128xf32> -> vector<16x128xf32>
    %cst_10 = arith.constant 5.000000e-01 : f32
    %30 = vector.broadcast %cst_10 : f32 to vector<16x128xf32>
    %31 = arith.mulf %29, %30 : vector<16x128xf32>
    %c0_11 = arith.constant 0 : index
    %c0_12 = arith.constant 0 : index
    %32 = vector.load %arg3[%c0_11, %c0_12] : memref<16x128xf32, #tpu.memory_space<vmem>>, vector<16x128xf32>
    %33 = arith.addf %31, %32 : vector<16x128xf32>
    %cst_13 = arith.constant dense<0xFF800000> : vector<16xf32>
    %34 = vector.multi_reduction <maximumf>, %33, %cst_13 [1] : vector<16x128xf32> to vector<16xf32>
    %35 = vector.shape_cast %34 : vector<16xf32> to vector<16x1xf32>
    %36 = vector.broadcast %35 : vector<16x1xf32> to vector<16x128xf32>
    %37 = arith.subf %33, %36 : vector<16x128xf32>
    %38 = math.exp %37 : vector<16x128xf32>
    %cst_14 = arith.constant dense<0.000000e+00> : vector<16x128xf32>
    %39 = tpu.matmul %38, %13, %cst_14 {dimension_numbers = #tpu.dot_dimension_numbers<[1], [0], [0], [1], [0, 0, 1, 1], [], []>} : vector<16x128xf32>, vector<128x128xf32>, vector<16x128xf32> -> vector<16x128xf32>
    %cst_15 = arith.constant 1.000000e-30 : f32
    %40 = vector.broadcast %cst_15 : f32 to vector<16x128xf32>
    %41 = arith.maximumf %39, %40 : vector<16x128xf32>
    %42 = tpu.reciprocal %41 {approx = true} : vector<16x128xf32> -> vector<16x128xf32>
    %43 = arith.mulf %38, %42 : vector<16x128xf32>
    %44 = tpu.concatenate %25, %25, %25, %25, %25, %25, %25, %25 in 0 : vector<16x32xf32>, vector<16x32xf32>, vector<16x32xf32>, vector<16x32xf32>, vector<16x32xf32>, vector<16x32xf32>, vector<16x32xf32>, vector<16x32xf32> -> vector<128x32xf32>
    %45 = arith.mulf %44, %12 : vector<128x32xf32>
    %cst_16 = arith.constant dense<0.000000e+00> : vector<16x32xf32>
    %46 = tpu.matmul %43, %45, %cst_16 {dimension_numbers = #tpu.dot_dimension_numbers<[1], [0], [0], [1], [0, 0, 1, 1], [], []>} : vector<16x128xf32>, vector<128x32xf32>, vector<16x32xf32> -> vector<16x32xf32>
    %47 = vector.extract_strided_slice %18 {offsets = [0, 96], sizes = [32, 32], strides = [1, 1]} : vector<32x128xf32> to vector<32x32xf32>
    %cst_17 = arith.constant dense<0.000000e+00> : vector<16x32xf32>
    %48 = tpu.matmul %46, %47, %cst_17 {dimension_numbers = #tpu.dot_dimension_numbers<[1], [0], [0], [1], [0, 0, 1, 1], [], []>} : vector<16x32xf32>, vector<32x32xf32>, vector<16x32xf32> -> vector<16x32xf32>
    %49 = vector.broadcast %2 : vector<1x32xf32> to vector<16x32xf32>
    %50 = arith.addf %48, %49 : vector<16x32xf32>
    %c0_18 = arith.constant 0 : index
    %c0_19 = arith.constant 0 : index
    %51 = vector.load %arg6[%c0_18, %c0_19] : memref<64x128xf32, #tpu.memory_space<vmem>>, vector<64x128xf32>
    %52 = vector.extract_strided_slice %51 {offsets = [0, 0], sizes = [32, 64], strides = [1, 1]} : vector<64x128xf32> to vector<32x64xf32>
    %53 = vector.extract_strided_slice %51 {offsets = [32, 0], sizes = [32, 64], strides = [1, 1]} : vector<64x128xf32> to vector<32x64xf32>
    %54 = vector.extract_strided_slice %51 {offsets = [0, 64], sizes = [64, 32], strides = [1, 1]} : vector<64x128xf32> to vector<64x32xf32>
    %55 = vector.extract_strided_slice %51 {offsets = [0, 96], sizes = [32, 1], strides = [1, 1]} : vector<64x128xf32> to vector<32x1xf32>
    %cst_20 = arith.constant dense<0.000000e+00> : vector<16x64xf32>
    %56 = tpu.matmul %17, %52, %cst_20 {dimension_numbers = #tpu.dot_dimension_numbers<[1], [0], [0], [1], [0, 0, 1, 1], [], []>} : vector<16x32xf32>, vector<32x64xf32>, vector<16x64xf32> -> vector<16x64xf32>
    %cst_21 = arith.constant dense<0.000000e+00> : vector<16x64xf32>
    %57 = tpu.matmul %50, %53, %cst_21 {dimension_numbers = #tpu.dot_dimension_numbers<[1], [0], [0], [1], [0, 0, 1, 1], [], []>} : vector<16x32xf32>, vector<32x64xf32>, vector<16x64xf32> -> vector<16x64xf32>
    %58 = arith.addf %56, %57 : vector<16x64xf32>
    %59 = vector.broadcast %3 : vector<1x64xf32> to vector<16x64xf32>
    %60 = arith.addf %58, %59 : vector<16x64xf32>
    %cst_22 = arith.constant dense<0.000000e+00> : vector<16xf32>
    %61 = vector.multi_reduction <add>, %60, %cst_22 [1] : vector<16x64xf32> to vector<16xf32>
    %62 = vector.shape_cast %61 : vector<16xf32> to vector<16x1xf32>
    %cst_23 = arith.constant 6.400000e+01 : f32
    %63 = vector.broadcast %cst_23 : f32 to vector<16x1xf32>
    %64 = arith.divf %62, %63 : vector<16x1xf32>
    %65 = vector.broadcast %64 : vector<16x1xf32> to vector<16x64xf32>
    %66 = arith.subf %60, %65 : vector<16x64xf32>
    %67 = arith.mulf %66, %66 : vector<16x64xf32>
    %cst_24 = arith.constant dense<0.000000e+00> : vector<16xf32>
    %68 = vector.multi_reduction <add>, %67, %cst_24 [1] : vector<16x64xf32> to vector<16xf32>
    %69 = vector.shape_cast %68 : vector<16xf32> to vector<16x1xf32>
    %cst_25 = arith.constant 6.400000e+01 : f32
    %70 = vector.broadcast %cst_25 : f32 to vector<16x1xf32>
    %71 = arith.divf %69, %70 : vector<16x1xf32>
    %72 = vector.broadcast %64 : vector<16x1xf32> to vector<16x64xf32>
    %73 = arith.subf %60, %72 : vector<16x64xf32>
    %cst_26 = arith.constant 9.99999974E-6 : f32
    %74 = vector.broadcast %cst_26 : f32 to vector<16x1xf32>
    %75 = arith.addf %71, %74 : vector<16x1xf32>
    %76 = math.rsqrt %75 : vector<16x1xf32>
    %77 = vector.broadcast %76 : vector<16x1xf32> to vector<16x64xf32>
    %78 = arith.mulf %73, %77 : vector<16x64xf32>
    %79 = vector.broadcast %4 : vector<1x64xf32> to vector<16x64xf32>
    %80 = arith.mulf %78, %79 : vector<16x64xf32>
    %81 = vector.broadcast %5 : vector<1x64xf32> to vector<16x64xf32>
    %82 = arith.addf %80, %81 : vector<16x64xf32>
    %cst_27 = arith.constant 0.000000e+00 : f32
    %83 = vector.broadcast %cst_27 : f32 to vector<16x64xf32>
    %84 = arith.maximumf %82, %83 : vector<16x64xf32>
    %cst_28 = arith.constant dense<0.000000e+00> : vector<16x32xf32>
    %85 = tpu.matmul %84, %54, %cst_28 {dimension_numbers = #tpu.dot_dimension_numbers<[1], [0], [0], [1], [0, 0, 1, 1], [], []>} : vector<16x64xf32>, vector<64x32xf32>, vector<16x32xf32> -> vector<16x32xf32>
    %86 = vector.broadcast %6 : vector<1x32xf32> to vector<16x32xf32>
    %87 = arith.addf %85, %86 : vector<16x32xf32>
    %cst_29 = arith.constant dense<0.000000e+00> : vector<16xf32>
    %88 = vector.multi_reduction <add>, %87, %cst_29 [1] : vector<16x32xf32> to vector<16xf32>
    %89 = vector.shape_cast %88 : vector<16xf32> to vector<16x1xf32>
    %cst_30 = arith.constant 3.200000e+01 : f32
    %90 = vector.broadcast %cst_30 : f32 to vector<16x1xf32>
    %91 = arith.divf %89, %90 : vector<16x1xf32>
    %92 = vector.broadcast %91 : vector<16x1xf32> to vector<16x32xf32>
    %93 = arith.subf %87, %92 : vector<16x32xf32>
    %94 = arith.mulf %93, %93 : vector<16x32xf32>
    %cst_31 = arith.constant dense<0.000000e+00> : vector<16xf32>
    %95 = vector.multi_reduction <add>, %94, %cst_31 [1] : vector<16x32xf32> to vector<16xf32>
    %96 = vector.shape_cast %95 : vector<16xf32> to vector<16x1xf32>
    %cst_32 = arith.constant 3.200000e+01 : f32
    %97 = vector.broadcast %cst_32 : f32 to vector<16x1xf32>
    %98 = arith.divf %96, %97 : vector<16x1xf32>
    %99 = vector.broadcast %91 : vector<16x1xf32> to vector<16x32xf32>
    %100 = arith.subf %87, %99 : vector<16x32xf32>
    %cst_33 = arith.constant 9.99999974E-6 : f32
    %101 = vector.broadcast %cst_33 : f32 to vector<16x1xf32>
    %102 = arith.addf %98, %101 : vector<16x1xf32>
    %103 = math.rsqrt %102 : vector<16x1xf32>
    %104 = vector.broadcast %103 : vector<16x1xf32> to vector<16x32xf32>
    %105 = arith.mulf %100, %104 : vector<16x32xf32>
    %106 = vector.broadcast %7 : vector<1x32xf32> to vector<16x32xf32>
    %107 = arith.mulf %105, %106 : vector<16x32xf32>
    %108 = vector.broadcast %8 : vector<1x32xf32> to vector<16x32xf32>
    %109 = arith.addf %107, %108 : vector<16x32xf32>
    %cst_34 = arith.constant 0.000000e+00 : f32
    %110 = vector.broadcast %cst_34 : f32 to vector<16x32xf32>
    %111 = arith.maximumf %109, %110 : vector<16x32xf32>
    %cst_35 = arith.constant dense<0.000000e+00> : vector<16x1xf32>
    %112 = tpu.matmul %111, %55, %cst_35 {dimension_numbers = #tpu.dot_dimension_numbers<[1], [0], [0], [1], [0, 0, 1, 1], [], []>} : vector<16x32xf32>, vector<32x1xf32>, vector<16x1xf32> -> vector<16x1xf32>
    %113 = vector.broadcast %9 : vector<1x1xf32> to vector<16x1xf32>
    %114 = arith.addf %112, %113 : vector<16x1xf32>
    %c0_36 = arith.constant 0 : index
    %c0_37 = arith.constant 0 : index
    %115 = vector.load %arg4[%c0_36, %c0_37] : memref<16x1xf32, #tpu.memory_space<vmem>>, vector<16x1xf32>
    %cst_38 = arith.constant 5.000000e-01 : f32
    %116 = vector.broadcast %cst_38 : f32 to vector<16x1xf32>
    %117 = arith.cmpf ogt, %115, %116 : vector<16x1xf32>
    %cst_39 = arith.constant 1.000000e-01 : f32
    %cst_40 = arith.constant 5.000000e+00 : f32
    %118 = vector.broadcast %cst_39 : f32 to vector<16x1xf32>
    %119 = arith.maximumf %118, %114 : vector<16x1xf32>
    %120 = vector.broadcast %cst_40 : f32 to vector<16x1xf32>
    %121 = arith.minimumf %120, %119 : vector<16x1xf32>
    %cst_41 = arith.constant 0.000000e+00 : f32
    %122 = vector.broadcast %cst_41 : f32 to vector<16x1xf32>
    %123 = arith.select %117, %121, %122 : vector<16x1xi1>, vector<16x1xf32>
    %c0_42 = arith.constant 0 : index
    %c0_43 = arith.constant 0 : index
    %124 = vector.load %arg9[%c0_42, %c0_43] : memref<16x1xf32, #tpu.memory_space<vmem>>, vector<16x1xf32>
    tpu.vector_store %arg9[%c0_42, %c0_43], %123 {strides = array<i32>} : memref<16x1xf32, #tpu.memory_space<vmem>>, vector<16x1xf32>,
    return
  }
  func.func @transform_0(%arg0: i32) -> (i32, i32) {
    %c0_i32 = arith.constant 0 : i32
    %c0_i32_0 = arith.constant 0 : i32
    %c0_i32_1 = arith.constant 0 : i32
    return %c0_i32, %c0_i32_0 : i32, i32
  }
  func.func @transform_1(%arg0: i32) -> (i32, i32) {
    %c0_i32 = arith.constant 0 : i32
    %c0_i32_0 = arith.constant 0 : i32
    %c0_i32_1 = arith.constant 0 : i32
    return %c0_i32, %c0_i32_0 : i32, i32
  }
  func.func @transform_2(%arg0: i32) -> (i32, i32) {
    %c0_i32 = arith.constant 0 : i32
    %c0_i32_0 = arith.constant 0 : i32
    %c0_i32_1 = arith.constant 0 : i32
    return %c0_i32, %c0_i32_0 : i32, i32
  }
  func.func @transform_3(%arg0: i32) -> (i32, i32) {
    %c0_i32 = arith.constant 0 : i32
    %c0_i32_0 = arith.constant 0 : i32
    %c0_i32_1 = arith.constant 0 : i32
    return %c0_i32, %c0_i32_0 : i32, i32
  }
  func.func @transform_4(%arg0: i32) -> (i32, i32) {
    %c0_i32 = arith.constant 0 : i32
    %c0_i32_0 = arith.constant 0 : i32
    %c0_i32_1 = arith.constant 0 : i32
    return %c0_i32, %c0_i32_0 : i32, i32
  }
  func.func @transform_5(%arg0: i32) -> (i32, i32) {
    %c0_i32 = arith.constant 0 : i32
    %c0_i32_0 = arith.constant 0 : i32
    %c0_i32_1 = arith.constant 0 : i32
    return %c0_i32, %c0_i32_0 : i32, i32
  }
  func.func @transform_6(%arg0: i32) -> (i32, i32) {
    %c0_i32 = arith.constant 0 : i32
    %c0_i32_0 = arith.constant 0 : i32
    %c0_i32_1 = arith.constant 0 : i32
    return %c0_i32, %c0_i32_0 : i32, i32
  }
  func.func @transform_7(%arg0: i32) -> (i32, i32) {
    %c0_i32 = arith.constant 0 : i32
    %c0_i32_0 = arith.constant 0 : i32
    %c0_i32_1 = arith.constant 0 : i32
    return %c0_i32, %c0_i32_0 : i32, i32
  }
  func.func @transform_8(%arg0: i32) -> (i32, i32) {
    %c0_i32 = arith.constant 0 : i32
    %c0_i32_0 = arith.constant 0 : i32
    %c0_i32_1 = arith.constant 0 : i32
    return %c0_i32, %c0_i32_0 : i32, i32
  }
}

</mosaic_0001>

<bundles_post_ra>
// kernel: tpu_custom_call.1
= control target key start
LH: loop header
LB: loop body
LE: loop exit
PB: predicated region body
PF: predicated region fallthrough
CT: control target
= control target key end

     0   :  { %13 = vsyncpa [#allocation3], 0  ;;  %s2403_s0 = inlined_call_operand.hbm [shape: f32[16,32], index: 0, kind: input, shape index: {}]   ;;  %s2404_s1 = inlined_call_operand.hbm [shape: f32[8,32], index: 1, kind: input, shape index: {}]   ;;  %s2405_s2 = inlined_call_operand.hbm [shape: f32[16,128], index: 2, kind: input, shape index: {}]   ;;  %s2406_s3 = inlined_call_operand.vmem [shape: f32[16,1], index: 3, kind: input, shape index: {}]   ;;  %s2407_s4 = inlined_call_operand.vmem [shape: f32[32,128], index: 4, kind: input, shape index: {}]   ;;  %s2408_s5 = inlined_call_operand.hbm [shape: f32[64,128], index: 5, kind: input, shape index: {}]   ;;  %s2409_s6 = inlined_call_operand.hbm [shape: f32[9,128], index: 6, kind: input, shape index: {}]   ;;  %s2410_s7 = inlined_call_operand.hbm [shape: f32[288,128], index: 7, kind: input, shape index: {}]   ;;  %s2411_s8 = inlined_call_operand.vmem [shape: f32[16,1], index: 8, kind: output, shape index: {}]  }
   0x1   :  { %14 = vsyncpa [#allocation5], 0 }
   0x2   :  { %15 = vsyncpa [#allocation8], 0 }
   0x3   :  { %16 = vsyncpa [#allocation11], 0  ;;  %s2025_s27 = smov [#allocation4]   ;;  %s1885_s9 = scalar_lea.hbm %s2404_s1, 128 }
   0x4   :  { %s35_s28 = sshll.u32 %s2025_s27, 4  ;;  %p1886_p0 = scmp.ne.s32.totalorder %s2404_s1, %s1885_s9  ;;  %s36_s28 = int_to_ptr.vmem [resolvable:$true] %s35_s28 }
   0x5   :  { %p1889_p1 = scmp.lt.u32.totalorder %s1885_s9, %s2404_s1 }
   0x7   :  { %p1891_p2 = pnand %p1889_p1, %p1886_p0 }
   0x9   :  { %1894 = shalt.err (!%p1891_p2)
}
   0xa   :  { %s1895_s14 = scalar_lea.vmem %s36_s28, 128  ;;  %p1900_p4 = scmp.lt.s32.totalorder %s36_s28, %s36_s28 }
   0xb   :  { %p1896_p3 = scmp.ne.s32.totalorder %s36_s28, %s1895_s14  ;;  %p1901_p5 = scmp.lt.s32.totalorder %s1895_s14, %s1895_s14 }
   0xd   :  { %p1902_p6 = por %p1901_p5, %p1900_p4 }
   0xf   :  { %p1903_p7 = pnand %p1902_p6, %p1896_p3 }
  0x11   :  { %1906 = shalt.err (!%p1903_p7)
}
  0x12   :  { %38 = dma.hbm_to_vmem [thread:$0]  %s2404_s1, 128, %s36_s28, [#allocation5]  }
  0x13   :  { %s2026_s17 = smov [#allocation7]   ;;  %s2027_s19 = smov [#allocation2]  }
  0x14   :  { %s60_s18 = sshll.u32 %s2026_s17, 4  ;;  %s22_s20 = sshll.u32 %s2027_s19, 4  ;;  %s61_s18 = int_to_ptr.vmem [resolvable:$true] %s60_s18  ;;  %s23_s20 = int_to_ptr.vmem [resolvable:$true] %s22_s20 }
  0x15   :  { %s1907_s23 = scalar_lea.hbm %s2408_s5, 1024 }
  0x16   :  { %p1908_p8 = scmp.ne.s32.totalorder %s2408_s5, %s1907_s23  ;;  %p1911_p9 = scmp.lt.u32.totalorder %s1907_s23, %s2408_s5 }
  0x18   :  { %p1913_p10 = pnand %p1911_p9, %p1908_p8 }
  0x1a   :  { %1916 = shalt.err (!%p1913_p10)
}
  0x1b   :  { %s1917_s1 = scalar_lea.vmem %s61_s18, 1024  ;;  %p1922_p12 = scmp.lt.s32.totalorder %s61_s18, %s61_s18 }
  0x1c   :  { %p1918_p11 = scmp.ne.s32.totalorder %s61_s18, %s1917_s1  ;;  %p1923_p13 = scmp.lt.s32.totalorder %s1917_s1, %s1917_s1 }
  0x1e   :  { %p1924_p0 = por %p1923_p13, %p1922_p12 }
  0x20   :  { %p1925_p1 = pnand %p1924_p0, %p1918_p11 }
  0x22   :  { %1928 = shalt.err (!%p1925_p1)
}
  0x23   :  { %s2028_s28 = smov 128   ;;  %s2029_s29 = smov 8  }
  0x24   :  { %66 = dma.hbm_to_vmem [thread:$0]  %s2408_s5, 1024, %s61_s18, [#allocation8], %s2028_s28, %s2028_s28, %s2029_s29  }
  0x25   :  { %s1929_s12 = scalar_lea.hbm %s2403_s0, 256 }
  0x26   :  { %p1930_p2 = scmp.ne.s32.totalorder %s2403_s0, %s1929_s12  ;;  %p1933_p3 = scmp.lt.u32.totalorder %s1929_s12, %s2403_s0 }
  0x28   :  { %p1935_p4 = pnand %p1933_p3, %p1930_p2 }
  0x2a   :  { %1938 = shalt.err (!%p1935_p4)
}
  0x2b   :  { %s1939_s17 = scalar_lea.vmem %s23_s20, 256  ;;  %p1944_p6 = scmp.lt.s32.totalorder %s23_s20, %s23_s20 }
  0x2c   :  { %p1940_p5 = scmp.ne.s32.totalorder %s23_s20, %s1939_s17  ;;  %p1945_p7 = scmp.lt.s32.totalorder %s1939_s17, %s1939_s17 }
  0x2e   :  { %p1946_p8 = por %p1945_p7, %p1944_p6 }
  0x30   :  { %p1947_p9 = pnand %p1946_p8, %p1940_p5 }
  0x32   :  { %1950 = shalt.err (!%p1947_p9)
}
  0x33   :  { %28 = dma.hbm_to_vmem [thread:$0]  %s2403_s0, 256, %s23_s20, [#allocation3], %s2028_s28, %s2028_s28, %s2029_s29  }
  0x34   :  { %s2030_s19 = smov [#allocation6]   ;;  %s2031_s22 = smov [#allocation9]  }
  0x35   :  { %s44_s21 = sshll.u32 %s2030_s19, 4  ;;  %s72_s23 = sshll.u32 %s2031_s22, 4  ;;  %s45_s21 = int_to_ptr.vmem [resolvable:$true] %s44_s21  ;;  %s73_s23 = int_to_ptr.vmem [resolvable:$true] %s72_s23 }
  0x36   :  { %s1951_s26 = scalar_lea.hbm %s2405_s2, 256 }
  0x37   :  { %p1952_p10 = scmp.ne.s32.totalorder %s2405_s2, %s1951_s26  ;;  %p1955_p11 = scmp.lt.u32.totalorder %s1951_s26, %s2405_s2 }
  0x39   :  { %p1957_p12 = pnand %p1955_p11, %p1952_p10 }
  0x3b   :  { %1960 = shalt.err (!%p1957_p12)
}
  0x3c   :  { %s1961_s0 = scalar_lea.vmem %s45_s21, 256  ;;  %p1966_p0 = scmp.lt.s32.totalorder %s45_s21, %s45_s21 }
  0x3d   :  { %p1962_p13 = scmp.ne.s32.totalorder %s45_s21, %s1961_s0  ;;  %p1967_p1 = scmp.lt.s32.totalorder %s1961_s0, %s1961_s0 }
  0x3f   :  { %p1968_p2 = por %p1967_p1, %p1966_p0 }
  0x41   :  { %p1969_p3 = pnand %p1968_p2, %p1962_p13 }
  0x43   :  { %1972 = shalt.err (!%p1969_p3)
}
  0x44   :  { %50 = dma.hbm_to_vmem [thread:$0]  %s2405_s2, 256, %s45_s21, [#allocation5], %s2028_s28, %s2028_s28, %s2029_s29  }
  0x45   :  { %s1973_s13 = scalar_lea.hbm %s2409_s6, 256 }
  0x46   :  { %p1974_p4 = scmp.ne.s32.totalorder %s2409_s6, %s1973_s13  ;;  %p1977_p5 = scmp.lt.u32.totalorder %s1973_s13, %s2409_s6 }
  0x48   :  { %p1979_p6 = pnand %p1977_p5, %p1974_p4 }
  0x4a   :  { %1982 = shalt.err (!%p1979_p6)
}
  0x4b   :  { %s1983_s5 = scalar_lea.vmem %s73_s23, 256  ;;  %p1988_p8 = scmp.lt.s32.totalorder %s73_s23, %s73_s23 }
  0x4c   :  { %p1984_p7 = scmp.ne.s32.totalorder %s73_s23, %s1983_s5  ;;  %p1989_p9 = scmp.lt.s32.totalorder %s1983_s5, %s1983_s5 }
  0x4e   :  { %p1990_p10 = por %p1989_p9, %p1988_p8 }
  0x50   :  { %p1991_p11 = pnand %p1990_p10, %p1984_p7 }
  0x52   :  { %1994 = shalt.err (!%p1991_p11)
}
  0x53   :  { %78 = dma.hbm_to_vmem [thread:$0]  %s2409_s6, 256, %s73_s23, [#allocation8], %s2028_s28, %s2028_s28, %s2029_s29  }
  0x54   :  { %s2032_s19 = smov [#allocation10]   ;;  %s1995_s25 = scalar_lea.hbm %s2410_s7, 4608 }
  0x55   :  { %s84_s21 = sshll.u32 %s2032_s19, 4  ;;  %p1996_p12 = scmp.ne.s32.totalorder %s2410_s7, %s1995_s25  ;;  %s85_s21 = int_to_ptr.vmem [resolvable:$true] %s84_s21 }
  0x56   :  { %p1999_p13 = scmp.lt.u32.totalorder %s1995_s25, %s2410_s7 }
  0x58   :  { %p2001_p0 = pnand %p1999_p13, %p1996_p12 }
  0x5a   :  { %2004 = shalt.err (!%p2001_p0)
}
  0x5b   :  { %s2005_s9 = scalar_lea.vmem %s85_s21, 4608  ;;  %p2010_p2 = scmp.lt.s32.totalorder %s85_s21, %s85_s21 }
  0x5c   :  { %p2006_p1 = scmp.ne.s32.totalorder %s85_s21, %s2005_s9  ;;  %p2011_p3 = scmp.lt.s32.totalorder %s2005_s9, %s2005_s9 }
  0x5e   :  { %p2012_p4 = por %p2011_p3, %p2010_p2 }
  0x60   :  { %p2013_p5 = pnand %p2012_p4, %p2006_p1 }
  0x62   :  { %2016 = shalt.err (!%p2013_p5)
}
  0x63   :  { %90 = dma.hbm_to_vmem [thread:$0]  %s2410_s7, 4608, %s85_s21, [#allocation11], %s2028_s28, %s2028_s28, %s2029_s29  }
  0x64   :  { %2017 = dma.done.wait [#allocation3], 256  }
  0x65   :  { %2018 = vsyncadd [#allocation3], 4294967040 }
  0x66   :  { %2019 = dma.done.wait [#allocation5], 384  }
  0x67   :  { %2020 = vsyncadd [#allocation5], 4294966912 }
  0x68   :  { %2021 = dma.done.wait [#allocation8], 1280  }
  0x69   :  { %2022 = vsyncadd [#allocation8], 4294966016 }
  0x6a   :  { %2023 = dma.done.wait [#allocation11], 4608  }
  0x6b   :  { %2024 = vsyncadd [#allocation11], 4294962688  ;;  %v2175_v0 = vld [vmem:[%s2407_s4] sm:$0xff]  ;;  %v2180_v1 = vld [vmem:[%s2407_s4 + $0x8] sm:$0xff]  ;;  %vm160_vm0 = vcmask 261120   ;;  %v156_v12 = vlaneseq  ;;  %s2034_s13 = smov 16  }
  0x6c   :  { %v2185_v2 = vld [vmem:[%s2407_s4 + $0x10] sm:$0xff]  ;;  %v1829_v3 = vpack.i.bf16 %v2180_v1, %v2175_v0  ;;  %v1643_v4 = vpack.c.bf16 %v2180_v1, %v2175_v0  ;;  %v2194_v5 = vld [vmem:[%s2407_s4 + $0x18] sm:$0xff]  ;;  %v147_v6 = vld [vmem:[#allocation2] sm:$0xff]  ;;  %s2033_s4 = smov 96   ;;  %s2035_s14 = smov 32   ;;  %vm370_vm1 = vcmask 130048  }
  0x6d   :  { %v1647_v7 = vpack.c.bf16 %v2194_v5, %v2185_v2  ;;  %v149_v8 = vld [vmem:[#allocation4] sm:$0xff]  ;;  %v148_v10 = vld [vmem:[#allocation2 + $0x8] sm:$0xff]  ;;  %v2206_v13 = vshrl.u32 %v156_v12, 7  ;;  %s2036_s15 = smov 48   ;;  %s2037_s16 = smov 80   ;;  %vm379_vm2 = vcmask 392192  }
  0x6e   :  { %1644 = vmatprep.subr.bf16.mxu0 %v1643_v4  ;;  %v2198_v9 = vadd.f32 %v149_v8, %v147_v6  ;;  %v2202_v11 = vadd.f32 %v149_v8, %v148_v10  ;;  %v2209_v15 = vld [vmem:[#allocation9] sm:$0xff]  ;;  %s2038_s17 = smov 64   ;;  %s2039_s5 = smov 112   ;;  %vm384_vm3 = vcmask 523264   ;;  %vm389_vm4 = vcmask 654336   ;;  %v111_v52 = vld [vmem:[#allocation10] sm:$0xff] }
  0x6f   :  { %1646 = vmatpush3.bf16.msra.mxu0 %v1643_v4  ;;  %v158_v14 = vsub.s32 0, %v2206_v13  ;;  %vm394_vm5 = vcmask 785408   ;;  %vm399_vm6 = vcmask 916480   ;;  %v112_v55 = vld [vmem:[#allocation10 + $0x8] sm:$0xff]  ;;  %vm1380_vm8 = vcmask 7168  }
  0x70   :  { %1648 = vmatprep.subr.bf16.mxu0 %v1647_v7  ;;  %1496 = vmatprep.mubr.msk.f32.mxu0 %vm160_vm0, %v2198_v9 }
  0x71   :  { %v159_v16 = vrot.slane %v2209_v15, %v158_v14 }
  0x73   :  { %1650 = vmatpush3.bf16.msra.mxu0 %v1647_v7 }
  0x76   :  { %1497 = vmatmul.mubr.msk.f32.vlgmr.msra.gmra.mrb[0].mxu0 %vm160_vm0, %v2202_v11 }
 0x149   :  { %v1498_v17 = vpop.f32.mrb[0].mxu0 }
 0x14a   :  { %v233_v18 = vpop.f32.mrb[1].mxu0  ;;  %v2218_v20 = vadd.f32 %v1498_v17, %v159_v16 }
 0x14b   :  { %v2212_v19 = vadd.f32 %v233_v18, %v159_v16 }
 0x14d   :  { %244 = vrot.lane.b32.xlu0 %v2212_v19, %s2033_s4  ;;  %1507 = vmatprep.mubr.msk.f32.mxu1 %vm160_vm0, %v2212_v19 }
 0x151   :  { %246 = vrot.lane.b32.xlu0 %v2218_v20, %s2033_s4 }
 0x1bf   :  { %v245_v21 = vpop.permute.xlu0 %244 }
 0x1c0   :  { %250 = vxpose.xlu1.b32.start [1/2] (short) (narrow) %v245_v21, 32 }
 0x1c3   :  { %v247_v22 = vpop.permute.xlu0 %246 }
 0x1c4   :  { %251 = vxpose.xlu1.b32.end [2/2] (short) (narrow) %v247_v22, 32 }
 0x240   :  { %v266_v23 = vpop.trf.xlu1 }
 0x241   :  { %286 = vrot.lane.b32.xlu0 %v266_v23, %s2034_s13 }
 0x244   :  { %v267_v24 = vpop.trf.xlu1 }
 0x245   :  { %298 = vrot.lane.b32.xlu0 %v266_v23, %s2035_s14  ;;  %288 = vrot.lane.b32.xlu1 %v267_v24, %s2034_s13 }
 0x248   :  { %v2225_v25 = vpop.trf.xlu1 }
 0x249   :  { %310 = vrot.lane.b32.xlu0 %v266_v23, %s2036_s15  ;;  %336 = vrot.lane.b32.xlu1 %v267_v24, %s2037_s16 }
 0x24c   :  { %v2229_v26 = vpop.trf.xlu1 }
 0x24d   :  { %322 = vrot.lane.b32.xlu0 %v266_v23, %s2038_s17  ;;  %348 = vrot.lane.b32.xlu1 %v267_v24, %s2033_s4 }
 0x251   :  { %334 = vrot.lane.b32.xlu0 %v266_v23, %s2037_s16  ;;  %360 = vrot.lane.b32.xlu1 %v267_v24, %s2039_s5 }
 0x255   :  { %346 = vrot.lane.b32.xlu0 %v266_v23, %s2033_s4  ;;  %304 = vrot.lane.b32.xlu1 %v2229_v26, %s2035_s14 }
 0x259   :  { %358 = vrot.lane.b32.xlu0 %v266_v23, %s2039_s5  ;;  %316 = vrot.lane.b32.xlu1 %v2229_v26, %s2036_s15 }
 0x25d   :  { %300 = vrot.lane.b32.xlu0 %v267_v24, %s2035_s14  ;;  %328 = vrot.lane.b32.xlu1 %v2229_v26, %s2038_s17 }
 0x261   :  { %312 = vrot.lane.b32.xlu0 %v267_v24, %s2036_s15  ;;  %340 = vrot.lane.b32.xlu1 %v2229_v26, %s2037_s16 }
 0x265   :  { %324 = vrot.lane.b32.xlu0 %v267_v24, %s2038_s17  ;;  %352 = vrot.lane.b32.xlu1 %v2229_v26, %s2033_s4 }
 0x269   :  { %290 = vrot.lane.b32.xlu0 %v2225_v25, %s2034_s13  ;;  %364 = vrot.lane.b32.xlu1 %v2229_v26, %s2039_s5 }
 0x26d   :  { %302 = vrot.lane.b32.xlu0 %v2225_v25, %s2035_s14 }
 0x271   :  { %314 = vrot.lane.b32.xlu0 %v2225_v25, %s2036_s15 }
 0x275   :  { %326 = vrot.lane.b32.xlu0 %v2225_v25, %s2038_s17 }
 0x279   :  { %338 = vrot.lane.b32.xlu0 %v2225_v25, %s2037_s16 }
 0x27d   :  { %292 = vrot.lane.b32.xlu0 %v2229_v26, %s2034_s13 }
 0x281   :  { %350 = vrot.lane.b32.xlu0 %v2225_v25, %s2033_s4 }
 0x285   :  { %362 = vrot.lane.b32.xlu0 %v2225_v25, %s2039_s5 }
 0x2b3   :  { %v287_v27 = vpop.permute.xlu0 %286 }
 0x2b4   :  { %v371_v39 = vsel %vm370_vm1, %v266_v23, %v287_v27 }
 0x2b7   :  { %v299_v28 = vpop.permute.xlu0 %298  ;;  %v289_v31 = vpop.permute.xlu1 %288 }
 0x2b8   :  { %v375_v41 = vsel %vm160_vm0, %v371_v39, %v299_v28  ;;  %v372_v42 = vsel %vm370_vm1, %v267_v24, %v289_v31 }
 0x2bb   :  { %v311_v29 = vpop.permute.xlu0 %310  ;;  %v337_v33 = vpop.permute.xlu1 %336 }
 0x2bc   :  { %v380_v43 = vsel %vm379_vm2, %v375_v41, %v311_v29  ;;  %v132_v41 = vld [vmem:[#allocation10 + $0xa8] sm:$0xff] }
 0x2bf   :  { %v323_v30 = vpop.permute.xlu0 %322  ;;  %v349_v35 = vpop.permute.xlu1 %348 }
 0x2c0   :  { %v385_v44 = vsel %vm384_vm3, %v380_v43, %v323_v30 }
 0x2c3   :  { %v335_v32 = vpop.permute.xlu0 %334  ;;  %v361_v38 = vpop.permute.xlu1 %360 }
 0x2c4   :  { %v390_v46 = vsel %vm389_vm4, %v385_v44, %v335_v32  ;;  %v113_v32 = vld [vmem:[#allocation10 + $0x10] sm:$0xff]  ;;  %v134_v44 = vld [vmem:[#allocation10 + $0xb8] sm:$0xff] }
 0x2c7   :  { %v347_v34 = vpop.permute.xlu0 %346  ;;  %v305_v47 = vpop.permute.xlu1 %304 }
 0x2c8   :  { %v395_v50 = vsel %vm394_vm5, %v390_v46, %v347_v34  ;;  %v135_v46 = vld [vmem:[#allocation10 + $0xc0] sm:$0xff] }
 0x2cb   :  { %v359_v36 = vpop.permute.xlu0 %358  ;;  %v317_v61 = vpop.permute.xlu1 %316 }
 0x2cc   :  { %v400_v53 = vsel %vm399_vm6, %v395_v50, %v359_v36  ;;  %v138_v50 = vld [vmem:[#allocation10 + $0xd8] sm:$0xff] }
 0x2cd   :  { %v404_v59 = vmul.f32 %v400_v53, %v111_v52  ;;  %v490_v53 = vld [vmem:[#allocation6 + $0x8] sm:$0xff] }
 0x2cf   :  { %v301_v37 = vpop.permute.xlu0 %300  ;;  %v329_v4 = vpop.permute.xlu1 %328 }
 0x2d0   :  { %v376_v45 = vsel %vm160_vm0, %v372_v42, %v301_v37  ;;  %v133_v42 = vld [vmem:[#allocation10 + $0xb0] sm:$0xff] }
 0x2d3   :  { %v313_v40 = vpop.permute.xlu0 %312  ;;  %v341_v8 = vpop.permute.xlu1 %340 }
 0x2d4   :  { %v381_v48 = vsel %vm379_vm2, %v376_v45, %v313_v40  ;;  %v131_v40 = vld [vmem:[#allocation10 + $0xa0] sm:$0xff]  ;;  %v1663_v45 = vpack.c.bf16 %v134_v44, %v133_v42 }
 0x2d5   :  { %v1659_v43 = vpack.c.bf16 %v132_v41, %v131_v40 }
 0x2d7   :  { %v325_v49 = vpop.permute.xlu0 %324  ;;  %v353_v12 = vpop.permute.xlu1 %352  ;;  %1660 = vmatprep.subr.bf16.mxu0 %v1659_v43 }
 0x2d8   :  { %v386_v51 = vsel %vm384_vm3, %v381_v48, %v325_v49  ;;  %1662 = vmatpush3.bf16.msra.mxu0 %v1659_v43  ;;  %v137_v49 = vld [vmem:[#allocation10 + $0xd0] sm:$0xff] }
 0x2d9   :  { %v391_v54 = vsel %vm389_vm4, %v386_v51, %v337_v33  ;;  %1664 = vmatprep.subr.bf16.mxu0 %v1663_v45  ;;  %v1671_v51 = vpack.c.bf16 %v138_v50, %v137_v49 }
 0x2da   :  { %v396_v56 = vsel %vm394_vm5, %v391_v54, %v349_v35 }
 0x2db   :  { %v291_v57 = vpop.permute.xlu0 %290  ;;  %v401_v58 = vsel %vm399_vm6, %v396_v56, %v361_v38  ;;  %v365_v29 = vpop.permute.xlu1 %364  ;;  %v489_v56 = vld [vmem:[#allocation6] sm:$0xff] }
 0x2dc   :  { %v405_v60 = vmul.f32 %v401_v58, %v112_v55  ;;  %v373_v18 = vsel %vm370_vm1, %v2225_v25, %v291_v57  ;;  %v114_v25 = vld [vmem:[#allocation10 + $0x18] sm:$0xff]  ;;  %1666 = vmatpush3.bf16.msra.mxu0 %v1663_v45 }
 0x2de   :  { %v1651_v62 = vpack.c.bf16 %v405_v60, %v404_v59  ;;  %v139_v60 = vld [vmem:[#allocation10 + $0xe0] sm:$0xff] }
 0x2df   :  { %v303_v63 = vpop.permute.xlu0 %302 }
 0x2e0   :  { %1652 = vmatprep.subr.bf16.mxu1 %v1651_v62  ;;  %v377_v22 = vsel %vm160_vm0, %v373_v18, %v303_v63  ;;  %v116_v63 = vld [vmem:[#allocation10 + $0x28] sm:$0xff]  ;;  %v117_v18 = vld [vmem:[#allocation10 + $0x30] sm:$0xff] }
 0x2e1   :  { %1654 = vmatpush3.bf16.msra.mxu1 %v1651_v62 }
 0x2e3   :  { %v315_v6 = vpop.permute.xlu0 %314 }
 0x2e4   :  { %v382_v27 = vsel %vm379_vm2, %v377_v22, %v315_v6  ;;  %v142_v6 = vld [vmem:[#allocation10 + $0xf8] sm:$0xff] }
 0x2e5   :  { %v146_v22 = vld [vmem:[#allocation10 + $0x118] sm:$0xff] }
 0x2e7   :  { %v327_v7 = vpop.permute.xlu0 %326 }
 0x2e8   :  { %v387_v30 = vsel %vm384_vm3, %v382_v27, %v327_v7  ;;  %v119_v27 = vld [vmem:[#allocation10 + $0x40] sm:$0xff] }
 0x2eb   :  { %v339_v10 = vpop.permute.xlu0 %338 }
 0x2ec   :  { %v392_v31 = vsel %vm389_vm4, %v387_v30, %v339_v10  ;;  %v115_v10 = vld [vmem:[#allocation10 + $0x20] sm:$0xff]  ;;  %v126_v30 = vld [vmem:[#allocation10 + $0x78] sm:$0xff] }
 0x2ef   :  { %v293_v14 = vpop.permute.xlu0 %292 }
 0x2f0   :  { %v374_v16 = vsel %vm370_vm1, %v2229_v26, %v293_v14  ;;  %v144_v14 = vld [vmem:[#allocation10 + $0x108] sm:$0xff] }
 0x2f1   :  { %v378_v17 = vsel %vm160_vm0, %v374_v16, %v305_v47  ;;  %v136_v47 = vld [vmem:[#allocation10 + $0xc8] sm:$0xff] }
 0x2f2   :  { %v383_v21 = vsel %vm379_vm2, %v378_v17, %v317_v61  ;;  %v1667_v48 = vpack.c.bf16 %v136_v47, %v135_v46  ;;  %v140_v61 = vld [vmem:[#allocation10 + $0xe8] sm:$0xff] }
 0x2f3   :  { %v388_v23 = vsel %vm384_vm3, %v383_v21, %v329_v4  ;;  %v351_v24 = vpop.permute.xlu0 %350  ;;  %v1675_v62 = vpack.c.bf16 %v140_v61, %v139_v60  ;;  %v141_v4 = vld [vmem:[#allocation10 + $0xf0] sm:$0xff]  ;;  %v120_v17 = vld [vmem:[#allocation10 + $0x48] sm:$0xff] }
 0x2f4   :  { %v393_v28 = vsel %vm389_vm4, %v388_v23, %v341_v8  ;;  %v397_v34 = vsel %vm394_vm5, %v392_v31, %v351_v24  ;;  %1668 = vmatprep.subr.bf16.mxu0 %v1667_v48  ;;  %v1679_v7 = vpack.c.bf16 %v142_v6, %v141_v4  ;;  %v118_v8 = vld [vmem:[#allocation10 + $0x38] sm:$0xff]  ;;  %v145_v21 = vld [vmem:[#allocation10 + $0x110] sm:$0xff]  ;;  %v128_v31 = vld [vmem:[#allocation10 + $0x88] sm:$0xff] }
 0x2f5   :  { %v398_v26 = vsel %vm394_vm5, %v393_v28, %v353_v12  ;;  %1670 = vmatpush3.bf16.msra.mxu0 %v1667_v48  ;;  %v143_v12 = vld [vmem:[#allocation10 + $0x100] sm:$0xff]  ;;  %v1687_v23 = vpack.c.bf16 %v146_v22, %v145_v21  ;;  %v122_v24 = vld [vmem:[#allocation10 + $0x58] sm:$0xff]  ;;  %v124_v28 = vld [vmem:[#allocation10 + $0x68] sm:$0xff] }
 0x2f6   :  { %v403_v33 = vsel %vm399_vm6, %v398_v26, %v365_v29  ;;  %1672 = vmatprep.subr.bf16.mxu0 %v1671_v51  ;;  %v1683_v16 = vpack.c.bf16 %v144_v14, %v143_v12  ;;  %v121_v29 = vld [vmem:[#allocation10 + $0x50] sm:$0xff]  ;;  %v123_v26 = vld [vmem:[#allocation10 + $0x60] sm:$0xff] }
 0x2f7   :  { %v363_v35 = vpop.permute.xlu0 %362  ;;  %v407_v38 = vmul.f32 %v403_v33, %v114_v25  ;;  %v130_v25 = vld [vmem:[#allocation10 + $0x98] sm:$0xff]  ;;  %v127_v33 = vld [vmem:[#allocation10 + $0x80] sm:$0xff] }
 0x2f8   :  { %v402_v36 = vsel %vm399_vm6, %v397_v34, %v363_v35  ;;  %v129_v34 = vld [vmem:[#allocation10 + $0x90] sm:$0xff] }
 0x2f9   :  { %v406_v37 = vmul.f32 %v402_v36, %v113_v32  ;;  %1674 = vmatpush3.bf16.msra.mxu0 %v1671_v51  ;;  %v125_v32 = vld [vmem:[#allocation10 + $0x70] sm:$0xff] }
 0x2fa   :  { %1676 = vmatprep.subr.bf16.mxu0 %v1675_v62 }
 0x2fb   :  { %v1655_v39 = vpack.c.bf16 %v407_v38, %v406_v37 }
 0x2fd   :  { %1656 = vmatprep.subr.bf16.mxu1 %v1655_v39  ;;  %1678 = vmatpush3.bf16.msra.mxu0 %v1675_v62 }
 0x2fe   :  { %1658 = vmatpush3.bf16.msra.mxu1 %v1655_v39  ;;  %1680 = vmatprep.subr.bf16.mxu0 %v1679_v7 }
 0x301   :  { %1508 = vmatmul.mubr.msk.f32.vlgmr.msra.gmra.mrb[0].mxu1 %vm160_vm0, %v2218_v20  ;;  %1682 = vmatpush3.bf16.msra.mxu0 %v1679_v7 }
 0x302   :  { %1684 = vmatprep.subr.bf16.mxu0 %v1683_v16 }
 0x305   :  { %1686 = vmatpush3.bf16.msra.mxu0 %v1683_v16 }
 0x306   :  { %1688 = vmatprep.subr.bf16.mxu0 %v1687_v23 }
 0x309   :  { %1690 = vmatpush3.bf16.msra.mxu0 %v1687_v23 }
 0x3d4   :  { %v1509_v52 = vpop.f32.mrb[0].mxu1 }
 0x3d5   :  { %v488_v54 = vmul.f32 0.5, %v1509_v52  ;;  %v478_v55 = vpop.f32.mrb[1].mxu1 }
 0x3d6   :  { %v487_v57 = vmul.f32 0.5, %v478_v55 }
 0x3d7   :  { %v492_v58 = vadd.f32 %v490_v53, %v488_v54 }
 0x3d8   :  { %v491_v59 = vadd.f32 %v489_v56, %v487_v57 }
 0x3d9   :  { %495 = vmax.xlane.f32.xlu1 %v492_v58 }
 0x3da   :  { %493 = vmax.xlane.f32.xlu0 %v491_v59 }
 0x3ea   :  { %602 = vrot.lane.b32.xlu1 %v116_v63, %s2038_s17 }
 0x3ee   :  { %606 = vrot.lane.b32.xlu1 %v118_v8, %s2038_s17 }
 0x3f0   :  { %600 = vrot.lane.b32.xlu0 %v115_v10, %s2038_s17 }
 0x3f2   :  { %610 = vrot.lane.b32.xlu1 %v120_v17, %s2038_s17 }
 0x3f4   :  { %604 = vrot.lane.b32.xlu0 %v117_v18, %s2038_s17 }
 0x3f6   :  { %614 = vrot.lane.b32.xlu1 %v122_v24, %s2038_s17 }
 0x3f8   :  { %608 = vrot.lane.b32.xlu0 %v119_v27, %s2038_s17 }
 0x3fa   :  { %618 = vrot.lane.b32.xlu1 %v124_v28, %s2038_s17 }
 0x3fc   :  { %612 = vrot.lane.b32.xlu0 %v121_v29, %s2038_s17 }
 0x3fe   :  { %622 = vrot.lane.b32.xlu1 %v126_v30, %s2038_s17 }
 0x400   :  { %616 = vrot.lane.b32.xlu0 %v123_v26, %s2038_s17 }
 0x402   :  { %626 = vrot.lane.b32.xlu1 %v128_v31, %s2038_s17  ;;  %v1834_v31 = vpack.i.bf16 %v2194_v5, %v2185_v2 }
 0x404   :  { %620 = vrot.lane.b32.xlu0 %v125_v32, %s2038_s17 }
 0x406   :  { %630 = vrot.lane.b32.xlu1 %v130_v25, %s2038_s17 }
 0x408   :  { %624 = vrot.lane.b32.xlu0 %v127_v33, %s2038_s17 }
 0x40c   :  { %628 = vrot.lane.b32.xlu0 %v129_v34, %s2038_s17 }
 0x466   :  { %v496_v35 = vpop.xlane.xlu1 %495 }
 0x467   :  { %v498_v36 = vsub.f32 %v492_v58, %v496_v35  ;;  %v494_v37 = vpop.xlane.xlu0 %493 }
 0x468   :  { %v497_v38 = vsub.f32 %v491_v59, %v494_v37 }
 0x469   :  { %v501_v39 = vmul.f32 1.442695, %v498_v36 }
 0x46a   :  { %v499_v40 = vmul.f32 1.442695, %v497_v38  ;;  %v603_v41 = vpop.permute.xlu1 %602 }
 0x46b   :  { %v649_v42 = vmul.f32 %v603_v41, %v2218_v20  ;;  %v601_v43 = vpop.permute.xlu0 %600 }
 0x46c   :  { %1869 = vpow2.f32 %v499_v40  ;;  %v648_v44 = vmul.f32 %v601_v43, %v2212_v19 }
 0x46d   :  { %1871 = vpow2.f32 %v501_v39 }
 0x46e   :  { %v1789_v45 = vpack.i.bf16 %v649_v42, %v648_v44  ;;  %v607_v46 = vpop.permute.xlu1 %606 }
 0x46f   :  { %v651_v47 = vmul.f32 %v607_v46, %v2218_v20  ;;  %v605_v48 = vpop.permute.xlu0 %604 }
 0x470   :  { %v650_v49 = vmul.f32 %v605_v48, %v2212_v19  ;;  %1790 = vrot.lane.b32.xlu0 %v1789_v45, %s2038_s17 }
 0x472   :  { %v1794_v50 = vpack.i.bf16 %v651_v47, %v650_v49  ;;  %v611_v51 = vpop.permute.xlu1 %610 }
 0x473   :  { %v653_v52 = vmul.f32 %v611_v51, %v2218_v20  ;;  %v609_v53 = vpop.permute.xlu0 %608 }
 0x474   :  { %v652_v54 = vmul.f32 %v609_v53, %v2212_v19  ;;  %1795 = vrot.lane.b32.xlu1 %v1794_v50, %s2038_s17 }
 0x476   :  { %v2312_v55 = vpop.eup %1869  ;;  %v1799_v56 = vpack.i.bf16 %v653_v52, %v652_v54  ;;  %v615_v57 = vpop.permute.xlu1 %614 }
 0x477   :  { %v2314_v58 = vpop.eup %1871  ;;  %v655_v59 = vmul.f32 %v615_v57, %v2218_v20  ;;  %1542 = vmatprep.mubr.f32.mxu0 %v2312_v55  ;;  %v613_v60 = vpop.permute.xlu0 %612 }
 0x478   :  { %v654_v61 = vmul.f32 %v613_v60, %v2212_v19  ;;  %1543 = vmatmul.mubr.f32.vlgmr.msra.gmra.mrb[2].mxu0 %v2314_v58  ;;  %1800 = vrot.lane.b32.xlu0 %v1799_v56, %s2038_s17 }
 0x47a   :  { %v1804_v62 = vpack.i.bf16 %v655_v59, %v654_v61  ;;  %v619_v63 = vpop.permute.xlu1 %618 }
 0x47b   :  { %v657_v4 = vmul.f32 %v619_v63, %v2218_v20  ;;  %v617_v6 = vpop.permute.xlu0 %616 }
 0x47c   :  { %v656_v7 = vmul.f32 %v617_v6, %v2212_v19  ;;  %1805 = vrot.lane.b32.xlu1 %v1804_v62, %s2038_s17 }
 0x47e   :  { %v1809_v8 = vpack.i.bf16 %v657_v4, %v656_v7  ;;  %v623_v10 = vpop.permute.xlu1 %622 }
 0x47f   :  { %v659_v12 = vmul.f32 %v623_v10, %v2218_v20  ;;  %v621_v14 = vpop.permute.xlu0 %620 }
 0x480   :  { %v658_v16 = vmul.f32 %v621_v14, %v2212_v19  ;;  %1810 = vrot.lane.b32.xlu0 %v1809_v8, %s2038_s17 }
 0x482   :  { %v1814_v17 = vpack.i.bf16 %v659_v12, %v658_v16  ;;  %v627_v18 = vpop.permute.xlu1 %626 }
 0x483   :  { %v661_v21 = vmul.f32 %v627_v18, %v2218_v20  ;;  %v625_v22 = vpop.permute.xlu0 %624 }
 0x484   :  { %v660_v23 = vmul.f32 %v625_v22, %v2212_v19  ;;  %1815 = vrot.lane.b32.xlu1 %v1814_v17, %s2038_s17  ;;  %v909_v22 = vld [vmem:[#allocation7 + $0x28] sm:$0xff] }
 0x486   :  { %v1819_v24 = vpack.i.bf16 %v661_v21, %v660_v23  ;;  %v631_v27 = vpop.permute.xlu1 %630  ;;  %v908_v21 = vld [vmem:[#allocation7 + $0x20] sm:$0xff] }
 0x487   :  { %v663_v28 = vmul.f32 %v631_v27, %v2218_v20  ;;  %v629_v29 = vpop.permute.xlu0 %628  ;;  %v1731_v23 = vpack.c.bf16 %v909_v22, %v908_v21 }
 0x488   :  { %v662_v30 = vmul.f32 %v629_v29, %v2212_v19  ;;  %1820 = vrot.lane.b32.xlu0 %v1819_v24, %s2038_s17  ;;  %v911_v29 = vld [vmem:[#allocation7 + $0x38] sm:$0xff] }
 0x48a   :  { %v1824_v26 = vpack.i.bf16 %v663_v28, %v662_v30  ;;  %v910_v28 = vld [vmem:[#allocation7 + $0x30] sm:$0xff] }
 0x48b   :  { %v1735_v30 = vpack.c.bf16 %v911_v29, %v910_v28 }
 0x48c   :  { %1825 = vrot.lane.b32.xlu1 %v1824_v26, %s2038_s17  ;;  %1830 = vrot.lane.b32.xlu0 %v1829_v3, %s2035_s14 }
 0x490   :  { %1835 = vrot.lane.b32.xlu1 %v1834_v31, %s2035_s14  ;;  %v805_v31 = vsub.s32 1, %v2206_v13 }
 0x4e2   :  { %v1791_v32 = vpop.permute.xlu0 %1790 }
 0x4e3   :  { %v1793_v20 = vunpack.i.h.bf16 %v1791_v32  ;;  %v1792_v25 = vunpack.i.l.bf16 %v1791_v32  ;;  %v806_v32 = vrot.slane %v2209_v15, %v805_v31 }
 0x4e5   :  { %v1691_v33 = vpack.c.bf16 %v1793_v20, %v1792_v25  ;;  %v906_v25 = vld [vmem:[#allocation7 + $0x10] sm:$0xff] }
 0x4e6   :  { %v1796_v19 = vpop.permute.xlu1 %1795 }
 0x4e7   :  { %v1798_v34 = vunpack.i.h.bf16 %v1796_v19  ;;  %v1797_v35 = vunpack.i.l.bf16 %v1796_v19  ;;  %1692 = vmatprep.subr.bf16.mxu1 %v1691_v33 }
 0x4e8   :  { %1694 = vmatpush3.bf16.msra.mxu1 %v1691_v33  ;;  %v907_v33 = vld [vmem:[#allocation7 + $0x18] sm:$0xff] }
 0x4e9   :  { %v1695_v36 = vpack.c.bf16 %v1798_v34, %v1797_v35 }
 0x4ea   :  { %v1801_v37 = vpop.permute.xlu0 %1800 }
 0x4eb   :  { %v1803_v38 = vunpack.i.h.bf16 %v1801_v37  ;;  %v1802_v39 = vunpack.i.l.bf16 %v1801_v37  ;;  %1696 = vmatprep.subr.bf16.mxu1 %v1695_v36  ;;  %v1070_v37 = vsub.s32 2, %v2206_v13 }
 0x4ec   :  { %1698 = vmatpush3.bf16.msra.mxu1 %v1695_v36  ;;  %v1743_v36 = vpack.c.bf16 %v907_v33, %v906_v25 }
 0x4ed   :  { %v1699_v0 = vpack.c.bf16 %v1803_v38, %v1802_v39  ;;  %v1071_v38 = vrot.slane %v2209_v15, %v1070_v37 }
 0x4ee   :  { %v1806_v1 = vpop.permute.xlu1 %1805 }
 0x4ef   :  { %v1808_v2 = vunpack.i.h.bf16 %v1806_v1  ;;  %v1807_v3 = vunpack.i.l.bf16 %v1806_v1  ;;  %1700 = vmatprep.subr.bf16.mxu1 %v1699_v0 }
 0x4f0   :  { %1702 = vmatpush3.bf16.msra.mxu1 %v1699_v0 }
 0x4f1   :  { %v1703_v5 = vpack.c.bf16 %v1808_v2, %v1807_v3 }
 0x4f2   :  { %v1811_v40 = vpop.permute.xlu0 %1810 }
 0x4f3   :  { %v1813_v41 = vunpack.i.h.bf16 %v1811_v40  ;;  %v1812_v42 = vunpack.i.l.bf16 %v1811_v40  ;;  %1704 = vmatprep.subr.bf16.mxu1 %v1703_v5  ;;  %v1854_v40 = vpack.i.bf16 %v911_v29, %v910_v28  ;;  %v1109_v28 = vsub.s32 4, %v2206_v13 }
 0x4f4   :  { %1706 = vmatpush3.bf16.msra.mxu1 %v1703_v5 }
 0x4f5   :  { %v1707_v43 = vpack.c.bf16 %v1813_v41, %v1812_v42 }
 0x4f6   :  { %v1816_v44 = vpop.permute.xlu1 %1815 }
 0x4f7   :  { %v1818_v45 = vunpack.i.h.bf16 %v1816_v44  ;;  %v1817_v46 = vunpack.i.l.bf16 %v1816_v44  ;;  %1708 = vmatprep.subr.bf16.mxu1 %v1707_v43 }
 0x4f8   :  { %1710 = vmatpush3.bf16.msra.mxu1 %v1707_v43 }
 0x4f9   :  { %v1711_v47 = vpack.c.bf16 %v1818_v45, %v1817_v46 }
 0x4fa   :  { %v1821_v48 = vpop.permute.xlu0 %1820 }
 0x4fb   :  { %v1823_v49 = vunpack.i.h.bf16 %v1821_v48  ;;  %v1822_v50 = vunpack.i.l.bf16 %v1821_v48  ;;  %1712 = vmatprep.subr.bf16.mxu1 %v1711_v47 }
 0x4fc   :  { %1714 = vmatpush3.bf16.msra.mxu1 %v1711_v47 }
 0x4fd   :  { %v1715_v51 = vpack.c.bf16 %v1823_v49, %v1822_v50 }
 0x4fe   :  { %v1826_v52 = vpop.permute.xlu1 %1825  ;;  %v1831_v53 = vpop.permute.xlu0 %1830 }
 0x4ff   :  { %v1828_v54 = vunpack.i.h.bf16 %v1826_v52  ;;  %v1827_v56 = vunpack.i.l.bf16 %v1826_v52  ;;  %1716 = vmatprep.subr.bf16.mxu1 %v1715_v51  ;;  %v1833_v57 = vunpack.i.h.bf16 %v1831_v53  ;;  %v1832_v59 = vunpack.i.l.bf16 %v1831_v53 }
 0x500   :  { %1718 = vmatpush3.bf16.msra.mxu1 %v1715_v51 }
 0x501   :  { %v1719_v60 = vpack.c.bf16 %v1828_v54, %v1827_v56  ;;  %v1723_v61 = vpack.c.bf16 %v1833_v57, %v1832_v59  ;;  %v2365_v54 = vpack.i.bf16 %v907_v33, %v906_v25 }
 0x502   :  { %v1836_v7 = vpop.permute.xlu1 %1835 }
 0x503   :  { %1720 = vmatprep.subr.bf16.mxu1 %v1719_v60  ;;  %1724 = vmatprep.subr.bf16.mxu0 %v1723_v61  ;;  %v1838_v8 = vunpack.i.h.bf16 %v1836_v7  ;;  %v1837_v10 = vunpack.i.l.bf16 %v1836_v7 }
 0x504   :  { %1722 = vmatpush3.bf16.msra.mxu1 %v1719_v60  ;;  %1726 = vmatpush3.bf16.msra.mxu0 %v1723_v61 }
 0x505   :  { %v1727_v12 = vpack.c.bf16 %v1838_v8, %v1837_v10  ;;  %1732 = vmatprep.subr.bf16.mxu1 %v1731_v23 }
 0x507   :  { %1728 = vmatprep.subr.bf16.mxu0 %v1727_v12 }
 0x508   :  { %1730 = vmatpush3.bf16.msra.mxu0 %v1727_v12 }
 0x54b   :  { %v1544_v62 = vpop.f32.mrb[2].mxu0 }
 0x54c   :  { %v579_v63 = vmax.f32 %v1544_v62, 1e-30  ;;  %v569_v4 = vpop.f32.mrb[3].mxu0 }
 0x54d   :  { %v578_v6 = vmax.f32 %v569_v4, 1e-30 }
 0x54e   :  { %1873 = vrcp.f32 %v579_v63 }
 0x54f   :  { %1875 = vrcp.f32 %v578_v6 }
 0x558   :  { %v1874_v14 = vpop.eup %1873 }
 0x559   :  { %v1876_v16 = vpop.eup %1875  ;;  %v583_v18 = vmul.f32 %v1874_v14, %v2314_v58  ;;  %v905_v58 = vld [vmem:[#allocation7 + $0x8] sm:$0xff] }
 0x55a   :  { %v582_v17 = vmul.f32 %v1876_v16, %v2312_v55  ;;  %v904_v55 = vld [vmem:[#allocation7] sm:$0xff]  ;;  %v1103_v16 = vsub.s32 3, %v2206_v13 }
 0x55b   :  { %v1739_v26 = vpack.c.bf16 %v905_v58, %v904_v55 }
 0x55c   :  { %1577 = vmatprep.mubr.f32.mxu1 %v582_v17 }
 0x55d   :  { %1578 = vmatmul.mubr.f32.vlgmr.msra.gmra.mrb[2].mxu1 %v583_v18 }
 0x55e   :  { %1734 = vmatpush3.bf16.msra.mxu1 %v1731_v23 }
 0x55f   :  { %1736 = vmatprep.subr.bf16.mxu1 %v1735_v30 }
 0x562   :  { %1738 = vmatpush3.bf16.msra.mxu1 %v1735_v30 }
 0x563   :  { %1740 = vmatprep.subr.bf16.mxu1 %v1739_v26 }
 0x630   :  { %v1579_v24 = vpop.f32.mrb[2].mxu1 }
 0x631   :  { %v794_v27 = vpop.f32.mrb[3].mxu1 }
 0x632   :  { %1588 = vmatprep.mubr.msk.f32.mxu0 %vm160_vm0, %v794_v27  ;;  %v1104_v27 = vrot.slane %v2209_v15, %v1103_v16 }
 0x633   :  { %1589 = vmatmul.mubr.msk.f32.vlgmr.msra.gmra.mrb[4].mxu0 %vm160_vm0, %v1579_v24 }
 0x706   :  { %v1590_v20 = vpop.f32.mrb[4].mxu0 }
 0x707   :  { %v895_v19 = vpop.f32.mrb[5].mxu0  ;;  %v901_v35 = vadd.f32 %v1590_v20, %v806_v32 }
 0x708   :  { %v896_v34 = vadd.f32 %v895_v19, %v806_v32  ;;  %v1117_v19 = vsub.s32 5, %v2206_v13 }
 0x70a   :  { %1599 = vmatprep.mubr.msk.f32.mxu1 %vm160_vm0, %v896_v34  ;;  %v1118_v34 = vrot.slane %v2209_v15, %v1117_v19 }
 0x70b   :  { %1600 = vmatmul.mubr.msk.f32.vlgmr.msra.gmra.mrb[4].mxu1 %vm160_vm0, %v901_v35 }
 0x70c   :  { %1742 = vmatpush3.bf16.msra.mxu1 %v1739_v26  ;;  %1610 = vmatprep.mubr.msk.f32.mxu1 %vm160_vm0, %v2198_v9  ;;  %v2357_v9 = vpack.i.bf16 %v905_v58, %v904_v55  ;;  %v1110_v58 = vrot.slane %v2209_v15, %v1109_v28 }
 0x70d   :  { %1744 = vmatprep.subr.bf16.mxu1 %v1743_v36 }
 0x710   :  { %1746 = vmatpush3.bf16.msra.mxu1 %v1743_v36 }
 0x713   :  { %1611 = vmatmul.mubr.msk.f32.vlgmr.msra.gmra.mrb[4].mxu1 %vm160_vm0, %v2202_v11  ;;  %v1849_v11 = vpack.i.bf16 %v909_v22, %v908_v21 }
 0x7e6   :  { %v1612_v39 = vpop.f32.mrb[4].mxu1 }
 0x7e7   :  { %v1073_v0 = vadd.f32 %v1612_v39, %v1071_v38  ;;  %v1059_v1 = vpop.f32.mrb[5].mxu1 }
 0x7e8   :  { %v1072_v2 = vadd.f32 %v1071_v38, %v1059_v1 }
 0x7e9   :  { %v1077_v3 = vsel %vm384_vm3, %v1073_v0, 0.0 }
 0x7ea   :  { %1078 = vadd.xlane.f32.xlu1 %v1077_v3  ;;  %v1074_v5 = vsel %vm384_vm3, %v1072_v2, 0.0 }
 0x7eb   :  { %1075 = vadd.xlane.f32.xlu0 %v1074_v5 }
 0x7fb   :  { %1840 = vrot.lane.b32.xlu1 %v2357_v9, %s2038_s17 }
 0x7ff   :  { %1850 = vrot.lane.b32.xlu1 %v1849_v11, %s2038_s17 }
 0x803   :  { %1855 = vrot.lane.b32.xlu1 %v1854_v40, %s2038_s17 }
 0x877   :  { %v1079_v41 = vpop.xlane.xlu1 %1078 }
 0x878   :  { %v1082_v42 = vmul.f32 0.015625, %v1079_v41  ;;  %v1076_v43 = vpop.xlane.xlu0 %1075 }
 0x879   :  { %v1081_v44 = vmul.f32 0.015625, %v1076_v43 }
 0x87a   :  { %v1084_v45 = vsub.f32 %v1073_v0, %v1082_v42 }
 0x87b   :  { %v1083_v46 = vsub.f32 %v1072_v2, %v1081_v44  ;;  %v1841_v51 = vpop.permute.xlu1 %1840 }
 0x87c   :  { %v1086_v47 = vmul.f32 %v1084_v45, %v1084_v45  ;;  %v1843_v52 = vunpack.i.h.bf16 %v1841_v51  ;;  %v1842_v53 = vunpack.i.l.bf16 %v1841_v51 }
 0x87d   :  { %v1085_v49 = vmul.f32 %v1083_v46, %v1083_v46 }
 0x87e   :  { %v1090_v48 = vsel %vm384_vm3, %v1086_v47, 0.0  ;;  %v1747_v56 = vpack.c.bf16 %v1843_v52, %v1842_v53 }
 0x87f   :  { %1091 = vadd.xlane.f32.xlu0 %v1090_v48  ;;  %v1087_v50 = vsel %vm384_vm3, %v1085_v49, 0.0  ;;  %v1851_v60 = vpop.permute.xlu1 %1850 }
 0x880   :  { %1748 = vmatprep.subr.bf16.mxu0 %v1747_v56  ;;  %v1853_v6 = vunpack.i.h.bf16 %v1851_v60  ;;  %v1852_v7 = vunpack.i.l.bf16 %v1851_v60  ;;  %v1261_v60 = vsub.s32 6, %v2206_v13 }
 0x881   :  { %1750 = vmatpush3.bf16.msra.mxu0 %v1747_v56 }
 0x882   :  { %v1755_v18 = vpack.c.bf16 %v1853_v6, %v1852_v7 }
 0x883   :  { %1088 = vadd.xlane.f32.xlu0 %v1087_v50  ;;  %v1856_v10 = vpop.permute.xlu1 %1855 }
 0x884   :  { %v1858_v21 = vunpack.i.h.bf16 %v1856_v10  ;;  %v1857_v22 = vunpack.i.l.bf16 %v1856_v10 }
 0x886   :  { %v1759_v24 = vpack.c.bf16 %v1858_v21, %v1857_v22 }
 0x899   :  { %1845 = vrot.lane.b32.xlu0 %v2365_v54, %s2038_s17 }
 0x90c   :  { %v1092_v57 = vpop.xlane.xlu0 %1091 }
 0x90d   :  { %v1094_v59 = vmul.f32 0.015625, %v1092_v57 }
 0x90f   :  { %v1096_v61 = vadd.f32 1e-05, %v1094_v59 }
 0x910   :  { %v1089_v62 = vpop.xlane.xlu0 %1088 }
 0x911   :  { %1877 = vrsqrt.f32 %v1096_v61  ;;  %v1093_v63 = vmul.f32 0.015625, %v1089_v62  ;;  %v1267_v61 = vsub.s32 7, %v2206_v13  ;;  %v1262_v62 = vrot.slane %v2209_v15, %v1261_v60  ;;  %v1403_v13 = vld [vmem:[#allocation9 + $0x8] ss:$0 sm:$0xff] }
 0x913   :  { %v1095_v4 = vadd.f32 1e-05, %v1093_v63  ;;  %v1268_v6 = vrot.slane %v2209_v15, %v1267_v61 }
 0x914   :  { %v1846_v8 = vpop.permute.xlu0 %1845 }
 0x915   :  { %1879 = vrsqrt.f32 %v1095_v4  ;;  %v1848_v12 = vunpack.i.h.bf16 %v1846_v8  ;;  %v1847_v14 = vunpack.i.l.bf16 %v1846_v8 }
 0x917   :  { %v1751_v17 = vpack.c.bf16 %v1848_v12, %v1847_v14 }
 0x919   :  { %1752 = vmatprep.subr.bf16.mxu0 %v1751_v17 }
 0x91a   :  { %1754 = vmatpush3.bf16.msra.mxu0 %v1751_v17 }
 0x91b   :  { %v1878_v23 = vpop.eup %1877  ;;  %1756 = vmatprep.subr.bf16.mxu0 %v1755_v18 }
 0x91c   :  { %v1100_v29 = vmul.f32 %v1878_v23, %v1084_v45  ;;  %v1371_v23 = vld [vmem:[%s2406_s3 + $0x8] sm:$0xff] }
 0x91d   :  { %vm1373_vm7 = vcmp.gt.f32.partialorder %v1371_v23, 0.5 }
 0x91e   :  { %1758 = vmatpush3.bf16.msra.mxu0 %v1755_v18  ;;  %v1106_v55 = vmul.f32 %v1104_v27, %v1100_v29 }
 0x91f   :  { %v1880_v30 = vpop.eup %1879  ;;  %1760 = vmatprep.subr.bf16.mxu0 %v1759_v24 }
 0x920   :  { %v1099_v26 = vmul.f32 %v1880_v30, %v1083_v46  ;;  %v1112_v32 = vadd.f32 %v1110_v58, %v1106_v55 }
 0x922   :  { %1762 = vmatpush3.bf16.msra.mxu0 %v1759_v24  ;;  %v1105_v31 = vmul.f32 %v1104_v27, %v1099_v26  ;;  %v1114_v33 = vmax.f32 %v1112_v32, 0.0  ;;  %v1370_v27 = vld [vmem:[%s2406_s3] sm:$0xff] }
 0x923   :  { %vm1372_vm9 = vcmp.gt.f32.partialorder %v1370_v27, 0.5 }
 0x924   :  { %v1111_v20 = vadd.f32 %v1110_v58, %v1105_v31 }
 0x926   :  { %v1113_v25 = vmax.f32 %v1111_v20, 0.0 }
 0x928   :  { %1629 = vmatprep.mubr.msk.f32.mxu0 %vm384_vm3, %v1113_v25 }
 0x929   :  { %1630 = vmatmul.mubr.msk.f32.vlgmr.msra.gmra.mrb[6].mxu0 %vm384_vm3, %v1114_v33 }
 0x9fc   :  { %v1631_v35 = vpop.f32.mrb[6].mxu0 }
 0x9fd   :  { %v1229_v36 = vadd.f32 %v1631_v35, %v1118_v34  ;;  %v1223_v37 = vpop.f32.mrb[7].mxu0 }
 0x9fe   :  { %v1224_v38 = vadd.f32 %v1223_v37, %v1118_v34 }
 0x9ff   :  { %v1235_v39 = vsel %vm160_vm0, %v1229_v36, 0.0 }
 0xa00   :  { %1236 = vadd.xlane.f32.xlu1 %v1235_v39  ;;  %v1232_v0 = vsel %vm160_vm0, %v1224_v38, 0.0 }
 0xa01   :  { %1233 = vadd.xlane.f32.xlu0 %v1232_v0 }
 0xa11   :  { %1860 = vrot.lane.b32.xlu1 %v2357_v9, %s2035_s14 }
 0xa8d   :  { %v1237_v1 = vpop.xlane.xlu1 %1236 }
 0xa8e   :  { %v1240_v2 = vmul.f32 0.03125, %v1237_v1  ;;  %v1234_v3 = vpop.xlane.xlu0 %1233 }
 0xa8f   :  { %v1239_v5 = vmul.f32 0.03125, %v1234_v3 }
 0xa90   :  { %v1242_v11 = vsub.f32 %v1229_v36, %v1240_v2 }
 0xa91   :  { %v1241_v40 = vsub.f32 %v1224_v38, %v1239_v5  ;;  %v1861_v45 = vpop.permute.xlu1 %1860 }
 0xa92   :  { %v1244_v43 = vmul.f32 %v1242_v11, %v1242_v11  ;;  %v1863_v46 = vunpack.i.h.bf16 %v1861_v45  ;;  %v1862_v9 = vunpack.i.l.bf16 %v1861_v45 }
 0xa93   :  { %v1243_v41 = vmul.f32 %v1241_v40, %v1241_v40 }
 0xa94   :  { %v1248_v44 = vsel %vm160_vm0, %v1244_v43, 0.0  ;;  %v1763_v47 = vpack.c.bf16 %v1863_v46, %v1862_v9 }
 0xa95   :  { %v1245_v42 = vsel %vm160_vm0, %v1243_v41, 0.0 }
 0xa96   :  { %1246 = vadd.xlane.f32.xlu0 %v1245_v42  ;;  %1764 = vmatprep.subr.bf16.mxu1 %v1763_v47 }
 0xa97   :  { %1766 = vmatpush3.bf16.msra.mxu1 %v1763_v47 }
 0xa9a   :  { %1249 = vadd.xlane.f32.xlu0 %v1248_v44 }
 0xab0   :  { %1865 = vrot.lane.b32.xlu0 %v2365_v54, %s2035_s14 }
 0xb23   :  { %v1247_v48 = vpop.xlane.xlu0 %1246 }
 0xb24   :  { %v1251_v49 = vmul.f32 0.03125, %v1247_v48 }
 0xb26   :  { %v1253_v50 = vadd.f32 1e-05, %v1251_v49 }
 0xb27   :  { %v1250_v51 = vpop.xlane.xlu0 %1249 }
 0xb28   :  { %1881 = vrsqrt.f32 %v1253_v50  ;;  %v1252_v52 = vmul.f32 0.03125, %v1250_v51 }
 0xb2a   :  { %v1254_v53 = vadd.f32 1e-05, %v1252_v52 }
 0xb2b   :  { %v1866_v56 = vpop.permute.xlu0 %1865 }
 0xb2c   :  { %1883 = vrsqrt.f32 %v1254_v53  ;;  %v1868_v57 = vunpack.i.h.bf16 %v1866_v56  ;;  %v1867_v59 = vunpack.i.l.bf16 %v1866_v56 }
 0xb2e   :  { %v1767_v54 = vpack.c.bf16 %v1868_v57, %v1867_v59 }
 0xb30   :  { %1768 = vmatprep.subr.bf16.mxu1 %v1767_v54 }
 0xb31   :  { %1770 = vmatpush3.bf16.msra.mxu1 %v1767_v54 }
 0xb32   :  { %v1882_v63 = vpop.eup %1881 }
 0xb33   :  { %v1257_v4 = vmul.f32 %v1882_v63, %v1241_v40 }
 0xb35   :  { %v1263_v7 = vmul.f32 %v1262_v62, %v1257_v4 }
 0xb36   :  { %v1884_v8 = vpop.eup %1883 }
 0xb37   :  { %v1258_v10 = vmul.f32 %v1884_v8, %v1242_v11  ;;  %v1269_v12 = vadd.f32 %v1268_v6, %v1263_v7 }
 0xb39   :  { %v1264_v14 = vmul.f32 %v1262_v62, %v1258_v10  ;;  %v1271_v16 = vmax.f32 %v1269_v12, 0.0 }
 0xb3b   :  { %v1270_v17 = vadd.f32 %v1268_v6, %v1264_v14  ;;  %1640 = vmatprep.mubr.msk.f32.mxu1 %vm160_vm0, %v1271_v16 }
 0xb3d   :  { %v1272_v18 = vmax.f32 %v1270_v17, 0.0 }
 0xb3f   :  { %1641 = vmatmul.mubr.msk.f32.vlgmr.msra.gmra.mrb[6].mxu1 %vm160_vm0, %v1272_v18 }
 0xc12   :  { %v1642_v21 = vpop.f32.mrb[6].mxu1 }
 0xc13   :  { %v1367_v22 = vadd.f32 %v1642_v21, %v1403_v13  ;;  %v1361_v15 = vpop.f32.mrb[7].mxu1 }
 0xc14   :  { %v1362_v24 = vadd.f32 %v1403_v13, %v1361_v15 }
 0xc15   :  { %v1375_v28 = vmax.f32 %v1367_v22, 0.1 }
 0xc16   :  { %v1374_v29 = vmax.f32 %v1362_v24, 0.1 }
 0xc17   :  { %v1377_v30 = vmin.f32 %v1375_v28, 5.0 }
 0xc18   :  { %v1376_v55 = vmin.f32 %v1374_v29, 5.0 }
 0xc19   :  { %v1379_v58 = vsel %vm1373_vm7, %v1377_v30, 0.0 }
 0xc1a   :  { %1382 = vst.msk [vmem:[%s2411_s8 + $0x8] sm:$0xff] %vm1380_vm8, %v1379_v58  ;;  %v1378_v26 = vsel %vm1372_vm9, %v1376_v55, 0.0 }
 0xc1b   :  { %1381 = vst.msk [vmem:[%s2411_s8] sm:$0xff] %vm1380_vm8, %v1378_v26 }
 0xc1c   :  { %1387 = vsyncpa [#allocation3], 1 }
 0xc1d   :  { %1388 = vsyncpa [#allocation5], 1 }
 0xc1e   :  { %1389 = vsyncpa [#allocation8], 1 }
 0xc1f   :  { %1390 = vsyncpa [#allocation11], 1 }

</bundles_post_ra>
